<compile_context>
chip_gen: v7x
topology: tpu7x:2x2x1
jax: 0.10.0
libtpu: 0.0.40
codegen_flags: <defaults>
</compile_context>

<pallas_src>
import functools

import jax
import jax.numpy as jnp
from jax.experimental import pallas as pl
from jax.experimental.pallas import tpu as pltpu


def _residual_block_kernel(x_ref, masks_ref, w1_ref, w2_ref, out_ref,
                           pad_ref, stack_ref, *, width, hw, nb, pad):
    # x_ref    : (Cp, L) VMEM, L = nb * H*W   (samples concatenated along lanes)
    # masks_ref: (9, L)  VMEM, combined edge/wrap mask per tap
    # w*_ref   : (Cp, 9*Cp) VMEM, im2col weights (tap-major columns)
    # out_ref  : (Cp, L) VMEM
    # pad_ref  : (Cp, L + 2*pad) VMEM scratch (halo-padded conv source)
    # stack_ref: (9*Cp, L) VMEM scratch (im2col operand)
    C, L = x_ref.shape
    eps = 1e-5
    inv_hw = 1.0 / hw

    # Zero the halo regions once per step: every halo read that matters is
    # masked to zero, but the pads must not hold NaN garbage (NaN * 0 = NaN).
    pad_ref[:, :pad] = jnp.zeros((C, pad), jnp.float32)
    pad_ref[:, pad + L:] = jnp.zeros((C, pad), jnp.float32)

    def conv3x3(g, w_ref):
        # "Same" 3x3 conv (cross-correlation, zero padding) as a single
        # im2col matmul: write g once into the padded scratch, take 9 static
        # flat shifts, mask invalid row/column/sample-wrap positions, stack
        # along sublanes, and do one (Cp, 9Cp) x (9Cp, L) MXU dot.
        pad_ref[:, pad:pad + L] = g
        for dy in (-1, 0, 1):
            for dx in (-1, 0, 1):
                t = (dy + 1) * 3 + (dx + 1)
                k = dy * width + dx
                if k == 0:
                    s = g                              # center tap, no mask
                else:
                    s = pad_ref[:, pad + k:pad + k + L] * masks_ref[t:t + 1, :]
                stack_ref[t * C:(t + 1) * C, :] = s    # sublane-tile aligned
        return jnp.dot(w_ref[...], stack_ref[...],
                       preferred_element_type=jnp.float32)

    def instance_norm(h):
        # InstanceNorm2d (affine=False, eps=1e-5): per (sample, channel) stats
        # over each sample's HW lane segment; one-pass sum / sum-of-squares.
        parts = []
        for s in range(nb):
            seg = h[:, s * hw:(s + 1) * hw]
            mean = jnp.sum(seg, axis=1, keepdims=True) * inv_hw
            ex2 = jnp.sum(seg * seg, axis=1, keepdims=True) * inv_hw
            var = jnp.maximum(ex2 - mean * mean, 0.0)
            parts.append((seg - mean) * jax.lax.rsqrt(var + eps))
        return parts[0] if nb == 1 else jnp.concatenate(parts, axis=1)

    f = x_ref[...]
    h = jnp.maximum(instance_norm(conv3x3(f, w1_ref)), 0.0)   # conv1 + IN + ReLU
    out_ref[...] = f + instance_norm(conv3x3(h, w2_ref))      # conv2 + IN + res


def _tpu_policy():
    # (multi_tensorcore, per-step VMEM budget in bytes)
    kind = ""
    try:
        kind = jax.devices()[0].device_kind.lower()
    except Exception:
        pass
    if "v7" in kind:
        return True, 40 * 2**20     # 64 MiB physical per TC -> leave headroom
    if "v5p" in kind or "v4" in kind:
        return True, 48 * 2**20     # megacore parts
    if "v6" in kind or "v5e" in kind or "v5 lite" in kind or "v5lite" in kind:
        return False, 64 * 2**20    # single TC, 128 MiB physical VMEM
    if "v2" in kind or "v3" in kind:
        return True, 12 * 2**20
    return False, 32 * 2**20


def _choose_block_n(N, Cp, HW, multi_core, vmem_budget):
    per_sample = Cp * HW * 4
    # Per-step live bytes ~ 4x block (double-buffered in+out) + 9x (im2col
    # scratch) + halo scratch + masks + register temporaries  => ~20x block.
    cap = max(1, int(vmem_budget) // (20 * per_sample))
    min_steps = 2 if (multi_core and N >= 2) else 1
    bn = max(1, min(N // min_steps, cap))
    while N % bn:
        bn -= 1
    # Partial blocks must keep a 128-aligned lane extent.
    if (bn * HW) % 128 != 0:
        bn = N
    return bn


def residual_block(x, w1, w2, block_n=None):
    # x: (N, C, H, W) f32; w1/w2: (C, C, 3, 3) f32 (PyTorch OIHW, bias=False).
    N, C, H, W = x.shape
    HW = H * W

    # Pad channels to a multiple of 8 (full sublanes); padded channels stay 0.
    Cp = max(8, ((C + 7) // 8) * 8)
    dC = Cp - C
    if dC:
        x = jnp.pad(x, ((0, 0), (0, dC), (0, 0), (0, 0)))
        w1 = jnp.pad(w1, ((0, dC), (0, dC), (0, 0), (0, 0)))
        w2 = jnp.pad(w2, ((0, dC), (0, dC), (0, 0), (0, 0)))

    multi_core, vmem_budget = _tpu_policy()
    if block_n is None:
        block_n = _choose_block_n(N, Cp, HW, multi_core, vmem_budget)
    assert N % block_n == 0
    L = block_n * HW
    PAD = 128 * (-(-(W + 1) // 128))          # halo >= W+1, lane aligned

    # Lane-dense activations: (Cp, N*HW), sample-major along lanes.
    x2d = jnp.transpose(x, (1, 0, 2, 3)).reshape(Cp, N * HW)
    # im2col weights: W2d[o, t*Cp + i] = w[o, i, kh, kw], t = kh*3 + kw.
    w1m = jnp.transpose(w1, (0, 2, 3, 1)).reshape(Cp, 9 * Cp)
    w2m = jnp.transpose(w2, (0, 2, 3, 1)).reshape(Cp, 9 * Cp)

    # Combined per-tap validity masks (handles row edges, column edges and
    # cross-sample wrap of the flat shifts), tiled across the samples in a block.
    yy = jnp.arange(HW, dtype=jnp.int32) // W
    xx = jnp.arange(HW, dtype=jnp.int32) % W
    tap_masks = []
    for dy in (-1, 0, 1):
        for dx in (-1, 0, 1):
            valid = ((yy + dy >= 0) & (yy + dy < H)
                     & (xx + dx >= 0) & (xx + dx < W))
            tap_masks.append(valid.astype(jnp.float32))
    masks = jnp.tile(jnp.stack(tap_masks), (1, block_n))       # (9, L)

    kernel = functools.partial(_residual_block_kernel, width=W, hw=HW,
                               nb=block_n, pad=PAD)
    out2d = pl.pallas_call(
        kernel,
        out_shape=jax.ShapeDtypeStruct((Cp, N * HW), jnp.float32),
        grid=(N // block_n,),
        in_specs=[
            pl.BlockSpec((Cp, L), lambda n: (0, n)),
            pl.BlockSpec((9, L), lambda n: (0, 0)),
            pl.BlockSpec((Cp, 9 * Cp), lambda n: (0, 0)),
            pl.BlockSpec((Cp, 9 * Cp), lambda n: (0, 0)),
        ],
        out_specs=pl.BlockSpec((Cp, L), lambda n: (0, n)),
        scratch_shapes=[
            pltpu.VMEM((Cp, L + 2 * PAD), jnp.float32),   # halo-padded source
            pltpu.VMEM((9 * Cp, L), jnp.float32),         # im2col operand
        ],
        compiler_params=pltpu.CompilerParams(
            dimension_semantics=("parallel",),
            vmem_limit_bytes=int(vmem_budget)),
    )(x2d, masks, w1m, w2m)

    out = out2d.reshape(Cp, N, H, W).transpose(1, 0, 2, 3)
    return out[:, :C]


def _reference(x, w1, w2):
    # Pure-JAX reference matching torch semantics (conv = cross-correlation).
    def conv(v, w):
        return jax.lax.conv_general_dilated(
            v, w, window_strides=(1, 1), padding=((1, 1), (1, 1)),
            dimension_numbers=("NCHW", "OIHW", "NCHW"),
            precision=jax.lax.Precision.HIGHEST)

    def inorm(v):
        mean = jnp.mean(v, axis=(2, 3), keepdims=True)
        var = jnp.mean((v - mean) ** 2, axis=(2, 3), keepdims=True)
        return (v - mean) / jnp.sqrt(var + 1e-5)

    h = jax.nn.relu(inorm(conv(x, w1)))
    return x + inorm(conv(h, w2))


if __name__ == "__main__":
    key = jax.random.PRNGKey(0)
    kx, k1, k2 = jax.random.split(key, 3)
    N, C, H, W = 2, 4, 16, 16
    x = jax.random.normal(kx, (N, C, H, W), dtype=jnp.float32)
    # Deterministic synthetic weights (shapes from nn.Conv2d(C, C, 3, bias=False)).
    w1 = 0.1 * jax.random.normal(k1, (C, C, 3, 3), dtype=jnp.float32)
    w2 = 0.1 * jax.random.normal(k2, (C, C, 3, 3), dtype=jnp.float32)

    out = jax.block_until_ready(residual_block(x, w1, w2))
    ref = _reference(x, w1, w2)
    assert out.shape == (N, C, H, W)
    assert jnp.allclose(out, ref, atol=1e-3, rtol=1e-3)
    print("KERNEL_OK")
</pallas_src>

<mosaic_0001>
module attributes {stable_mosaic.version = 11 : i64} {
  func.func @_residual_block_kernel(%arg0: i32, %arg1: memref<8x512xf32, #tpu.memory_space<vmem>>, %arg2: memref<9x512xf32, #tpu.memory_space<vmem>>, %arg3: memref<8x72xf32, #tpu.memory_space<vmem>>, %arg4: memref<8x72xf32, #tpu.memory_space<vmem>>, %arg5: memref<8x512xf32, #tpu.memory_space<vmem>>, %arg6: memref<8x768xf32, #tpu.memory_space<vmem>>, %arg7: memref<72x512xf32, #tpu.memory_space<vmem>>) attributes {dimension_semantics = [#tpu.dimension_semantics<parallel>], iteration_bounds = array<i64: 1>, scalar_prefetch = 0 : i64, scratch_operands = 2 : i64, tpu.core_type = #tpu.core_type<tc>, window_params = [{transform_indices = @transform_0, window_bounds = array<i64: 8, 512>}, {pipeline_mode = #tpu.pipeline_mode<synchronous>, transform_indices = @transform_1, window_bounds = array<i64: 9, 512>}, {pipeline_mode = #tpu.pipeline_mode<synchronous>, transform_indices = @transform_2, window_bounds = array<i64: 8, 72>}, {pipeline_mode = #tpu.pipeline_mode<synchronous>, transform_indices = @transform_3, window_bounds = array<i64: 8, 72>}, {transform_indices = @transform_4, window_bounds = array<i64: 8, 512>}]} {
    %cst = arith.constant 0.000000e+00 : f32
    %0 = vector.broadcast %cst : f32 to vector<8x128xf32>
    %c0 = arith.constant 0 : index
    %c0_0 = arith.constant 0 : index
    %1 = vector.load %arg6[%c0, %c0_0] : memref<8x768xf32, #tpu.memory_space<vmem>>, vector<8x128xf32>
    tpu.vector_store %arg6[%c0, %c0_0], %0 {strides = array<i32>} : memref<8x768xf32, #tpu.memory_space<vmem>>, vector<8x128xf32>,
    %cst_1 = arith.constant 0.000000e+00 : f32
    %2 = vector.broadcast %cst_1 : f32 to vector<8x128xf32>
    %c0_2 = arith.constant 0 : index
    %c640 = arith.constant 640 : index
    %3 = vector.load %arg6[%c0_2, %c640] : memref<8x768xf32, #tpu.memory_space<vmem>>, vector<8x128xf32>
    tpu.vector_store %arg6[%c0_2, %c640], %2 {strides = array<i32>} : memref<8x768xf32, #tpu.memory_space<vmem>>, vector<8x128xf32>,
    %c0_3 = arith.constant 0 : index
    %c0_4 = arith.constant 0 : index
    %4 = vector.load %arg1[%c0_3, %c0_4] : memref<8x512xf32, #tpu.memory_space<vmem>>, vector<8x512xf32>
    %c0_5 = arith.constant 0 : index
    %c128 = arith.constant 128 : index
    %5 = vector.load %arg6[%c0_5, %c128] : memref<8x768xf32, #tpu.memory_space<vmem>>, vector<8x512xf32>
    tpu.vector_store %arg6[%c0_5, %c128], %4 {strides = array<i32>} : memref<8x768xf32, #tpu.memory_space<vmem>>, vector<8x512xf32>,
    %c0_6 = arith.constant 0 : index
    %c111 = arith.constant 111 : index
    %6 = vector.load %arg6[%c0_6, %c111] : memref<8x768xf32, #tpu.memory_space<vmem>>, vector<8x512xf32>
    %c0_7 = arith.constant 0 : index
    %c0_8 = arith.constant 0 : index
    %7 = vector.load %arg2[%c0_7, %c0_8] : memref<9x512xf32, #tpu.memory_space<vmem>>, vector<1x512xf32>
    %8 = vector.broadcast %7 : vector<1x512xf32> to vector<8x512xf32>
    %9 = arith.mulf %6, %8 : vector<8x512xf32>
    %c0_9 = arith.constant 0 : index
    %c0_10 = arith.constant 0 : index
    %10 = vector.load %arg7[%c0_9, %c0_10] : memref<72x512xf32, #tpu.memory_space<vmem>>, vector<8x512xf32>
    tpu.vector_store %arg7[%c0_9, %c0_10], %9 {strides = array<i32>} : memref<72x512xf32, #tpu.memory_space<vmem>>, vector<8x512xf32>,
    %c0_11 = arith.constant 0 : index
    %c112 = arith.constant 112 : index
    %11 = vector.load %arg6[%c0_11, %c112] : memref<8x768xf32, #tpu.memory_space<vmem>>, vector<8x512xf32>
    %c1 = arith.constant 1 : index
    %c0_12 = arith.constant 0 : index
    %12 = vector.load %arg2[%c1, %c0_12] : memref<9x512xf32, #tpu.memory_space<vmem>>, vector<1x512xf32>
    %13 = vector.broadcast %12 : vector<1x512xf32> to vector<8x512xf32>
    %14 = arith.mulf %11, %13 : vector<8x512xf32>
    %c8 = arith.constant 8 : index
    %c0_13 = arith.constant 0 : index
    %15 = vector.load %arg7[%c8, %c0_13] : memref<72x512xf32, #tpu.memory_space<vmem>>, vector<8x512xf32>
    tpu.vector_store %arg7[%c8, %c0_13], %14 {strides = array<i32>} : memref<72x512xf32, #tpu.memory_space<vmem>>, vector<8x512xf32>,
    %c0_14 = arith.constant 0 : index
    %c113 = arith.constant 113 : index
    %16 = vector.load %arg6[%c0_14, %c113] : memref<8x768xf32, #tpu.memory_space<vmem>>, vector<8x512xf32>
    %c2 = arith.constant 2 : index
    %c0_15 = arith.constant 0 : index
    %17 = vector.load %arg2[%c2, %c0_15] : memref<9x512xf32, #tpu.memory_space<vmem>>, vector<1x512xf32>
    %18 = vector.broadcast %17 : vector<1x512xf32> to vector<8x512xf32>
    %19 = arith.mulf %16, %18 : vector<8x512xf32>
    %c16 = arith.constant 16 : index
    %c0_16 = arith.constant 0 : index
    %20 = vector.load %arg7[%c16, %c0_16] : memref<72x512xf32, #tpu.memory_space<vmem>>, vector<8x512xf32>
    tpu.vector_store %arg7[%c16, %c0_16], %19 {strides = array<i32>} : memref<72x512xf32, #tpu.memory_space<vmem>>, vector<8x512xf32>,
    %c0_17 = arith.constant 0 : index
    %c127 = arith.constant 127 : index
    %21 = vector.load %arg6[%c0_17, %c127] : memref<8x768xf32, #tpu.memory_space<vmem>>, vector<8x512xf32>
    %c3 = arith.constant 3 : index
    %c0_18 = arith.constant 0 : index
    %22 = vector.load %arg2[%c3, %c0_18] : memref<9x512xf32, #tpu.memory_space<vmem>>, vector<1x512xf32>
    %23 = vector.broadcast %22 : vector<1x512xf32> to vector<8x512xf32>
    %24 = arith.mulf %21, %23 : vector<8x512xf32>
    %c24 = arith.constant 24 : index
    %c0_19 = arith.constant 0 : index
    %25 = vector.load %arg7[%c24, %c0_19] : memref<72x512xf32, #tpu.memory_space<vmem>>, vector<8x512xf32>
    tpu.vector_store %arg7[%c24, %c0_19], %24 {strides = array<i32>} : memref<72x512xf32, #tpu.memory_space<vmem>>, vector<8x512xf32>,
    %c32 = arith.constant 32 : index
    %c0_20 = arith.constant 0 : index
    %26 = vector.load %arg7[%c32, %c0_20] : memref<72x512xf32, #tpu.memory_space<vmem>>, vector<8x512xf32>
    tpu.vector_store %arg7[%c32, %c0_20], %4 {strides = array<i32>} : memref<72x512xf32, #tpu.memory_space<vmem>>, vector<8x512xf32>,
    %c0_21 = arith.constant 0 : index
    %c129 = arith.constant 129 : index
    %27 = vector.load %arg6[%c0_21, %c129] : memref<8x768xf32, #tpu.memory_space<vmem>>, vector<8x512xf32>
    %c5 = arith.constant 5 : index
    %c0_22 = arith.constant 0 : index
    %28 = vector.load %arg2[%c5, %c0_22] : memref<9x512xf32, #tpu.memory_space<vmem>>, vector<1x512xf32>
    %29 = vector.broadcast %28 : vector<1x512xf32> to vector<8x512xf32>
    %30 = arith.mulf %27, %29 : vector<8x512xf32>
    %c40 = arith.constant 40 : index
    %c0_23 = arith.constant 0 : index
    %31 = vector.load %arg7[%c40, %c0_23] : memref<72x512xf32, #tpu.memory_space<vmem>>, vector<8x512xf32>
    tpu.vector_store %arg7[%c40, %c0_23], %30 {strides = array<i32>} : memref<72x512xf32, #tpu.memory_space<vmem>>, vector<8x512xf32>,
    %c0_24 = arith.constant 0 : index
    %c143 = arith.constant 143 : index
    %32 = vector.load %arg6[%c0_24, %c143] : memref<8x768xf32, #tpu.memory_space<vmem>>, vector<8x512xf32>
    %c6 = arith.constant 6 : index
    %c0_25 = arith.constant 0 : index
    %33 = vector.load %arg2[%c6, %c0_25] : memref<9x512xf32, #tpu.memory_space<vmem>>, vector<1x512xf32>
    %34 = vector.broadcast %33 : vector<1x512xf32> to vector<8x512xf32>
    %35 = arith.mulf %32, %34 : vector<8x512xf32>
    %c48 = arith.constant 48 : index
    %c0_26 = arith.constant 0 : index
    %36 = vector.load %arg7[%c48, %c0_26] : memref<72x512xf32, #tpu.memory_space<vmem>>, vector<8x512xf32>
    tpu.vector_store %arg7[%c48, %c0_26], %35 {strides = array<i32>} : memref<72x512xf32, #tpu.memory_space<vmem>>, vector<8x512xf32>,
    %c0_27 = arith.constant 0 : index
    %c144 = arith.constant 144 : index
    %37 = vector.load %arg6[%c0_27, %c144] : memref<8x768xf32, #tpu.memory_space<vmem>>, vector<8x512xf32>
    %c7 = arith.constant 7 : index
    %c0_28 = arith.constant 0 : index
    %38 = vector.load %arg2[%c7, %c0_28] : memref<9x512xf32, #tpu.memory_space<vmem>>, vector<1x512xf32>
    %39 = vector.broadcast %38 : vector<1x512xf32> to vector<8x512xf32>
    %40 = arith.mulf %37, %39 : vector<8x512xf32>
    %c56 = arith.constant 56 : index
    %c0_29 = arith.constant 0 : index
    %41 = vector.load %arg7[%c56, %c0_29] : memref<72x512xf32, #tpu.memory_space<vmem>>, vector<8x512xf32>
    tpu.vector_store %arg7[%c56, %c0_29], %40 {strides = array<i32>} : memref<72x512xf32, #tpu.memory_space<vmem>>, vector<8x512xf32>,
    %c0_30 = arith.constant 0 : index
    %c145 = arith.constant 145 : index
    %42 = vector.load %arg6[%c0_30, %c145] : memref<8x768xf32, #tpu.memory_space<vmem>>, vector<8x512xf32>
    %c8_31 = arith.constant 8 : index
    %c0_32 = arith.constant 0 : index
    %43 = vector.load %arg2[%c8_31, %c0_32] : memref<9x512xf32, #tpu.memory_space<vmem>>, vector<1x512xf32>
    %44 = vector.broadcast %43 : vector<1x512xf32> to vector<8x512xf32>
    %45 = arith.mulf %42, %44 : vector<8x512xf32>
    %c64 = arith.constant 64 : index
    %c0_33 = arith.constant 0 : index
    %46 = vector.load %arg7[%c64, %c0_33] : memref<72x512xf32, #tpu.memory_space<vmem>>, vector<8x512xf32>
    tpu.vector_store %arg7[%c64, %c0_33], %45 {strides = array<i32>} : memref<72x512xf32, #tpu.memory_space<vmem>>, vector<8x512xf32>,
    %c0_34 = arith.constant 0 : index
    %c0_35 = arith.constant 0 : index
    %47 = vector.load %arg3[%c0_34, %c0_35] : memref<8x72xf32, #tpu.memory_space<vmem>>, vector<8x72xf32>
    %c0_36 = arith.constant 0 : index
    %c0_37 = arith.constant 0 : index
    %48 = vector.load %arg7[%c0_36, %c0_37] : memref<72x512xf32, #tpu.memory_space<vmem>>, vector<72x512xf32>
    %cst_38 = arith.constant dense<0.000000e+00> : vector<8x512xf32>
    %49 = tpu.matmul %47, %48, %cst_38 {dimension_numbers = #tpu.dot_dimension_numbers<[1], [0], [0], [1], [0, 0, 1, 1], [], []>} : vector<8x72xf32>, vector<72x512xf32>, vector<8x512xf32> -> vector<8x512xf32>
    %50 = vector.extract_strided_slice %49 {offsets = [0, 0], sizes = [8, 256], strides = [1, 1]} : vector<8x512xf32> to vector<8x256xf32>
    %cst_39 = arith.constant dense<0.000000e+00> : vector<8xf32>
    %51 = vector.multi_reduction <add>, %50, %cst_39 [1] : vector<8x256xf32> to vector<8xf32>
    %52 = vector.shape_cast %51 : vector<8xf32> to vector<8x1xf32>
    %cst_40 = arith.constant 3.906250e-03 : f32
    %53 = vector.broadcast %cst_40 : f32 to vector<8x1xf32>
    %54 = arith.mulf %52, %53 : vector<8x1xf32>
    %55 = arith.mulf %50, %50 : vector<8x256xf32>
    %cst_41 = arith.constant dense<0.000000e+00> : vector<8xf32>
    %56 = vector.multi_reduction <add>, %55, %cst_41 [1] : vector<8x256xf32> to vector<8xf32>
    %57 = vector.shape_cast %56 : vector<8xf32> to vector<8x1xf32>
    %cst_42 = arith.constant 3.906250e-03 : f32
    %58 = vector.broadcast %cst_42 : f32 to vector<8x1xf32>
    %59 = arith.mulf %57, %58 : vector<8x1xf32>
    %60 = arith.mulf %54, %54 : vector<8x1xf32>
    %61 = arith.subf %59, %60 : vector<8x1xf32>
    %cst_43 = arith.constant 0.000000e+00 : f32
    %62 = vector.broadcast %cst_43 : f32 to vector<8x1xf32>
    %63 = arith.maximumf %61, %62 : vector<8x1xf32>
    %64 = vector.broadcast %54 : vector<8x1xf32> to vector<8x256xf32>
    %65 = arith.subf %50, %64 : vector<8x256xf32>
    %cst_44 = arith.constant 9.99999974E-6 : f32
    %66 = vector.broadcast %cst_44 : f32 to vector<8x1xf32>
    %67 = arith.addf %63, %66 : vector<8x1xf32>
    %68 = math.rsqrt %67 : vector<8x1xf32>
    %69 = vector.broadcast %68 : vector<8x1xf32> to vector<8x256xf32>
    %70 = arith.mulf %65, %69 : vector<8x256xf32>
    %71 = vector.extract_strided_slice %49 {offsets = [0, 256], sizes = [8, 256], strides = [1, 1]} : vector<8x512xf32> to vector<8x256xf32>
    %cst_45 = arith.constant dense<0.000000e+00> : vector<8xf32>
    %72 = vector.multi_reduction <add>, %71, %cst_45 [1] : vector<8x256xf32> to vector<8xf32>
    %73 = vector.shape_cast %72 : vector<8xf32> to vector<8x1xf32>
    %cst_46 = arith.constant 3.906250e-03 : f32
    %74 = vector.broadcast %cst_46 : f32 to vector<8x1xf32>
    %75 = arith.mulf %73, %74 : vector<8x1xf32>
    %76 = arith.mulf %71, %71 : vector<8x256xf32>
    %cst_47 = arith.constant dense<0.000000e+00> : vector<8xf32>
    %77 = vector.multi_reduction <add>, %76, %cst_47 [1] : vector<8x256xf32> to vector<8xf32>
    %78 = vector.shape_cast %77 : vector<8xf32> to vector<8x1xf32>
    %cst_48 = arith.constant 3.906250e-03 : f32
    %79 = vector.broadcast %cst_48 : f32 to vector<8x1xf32>
    %80 = arith.mulf %78, %79 : vector<8x1xf32>
    %81 = arith.mulf %75, %75 : vector<8x1xf32>
    %82 = arith.subf %80, %81 : vector<8x1xf32>
    %cst_49 = arith.constant 0.000000e+00 : f32
    %83 = vector.broadcast %cst_49 : f32 to vector<8x1xf32>
    %84 = arith.maximumf %82, %83 : vector<8x1xf32>
    %85 = vector.broadcast %75 : vector<8x1xf32> to vector<8x256xf32>
    %86 = arith.subf %71, %85 : vector<8x256xf32>
    %cst_50 = arith.constant 9.99999974E-6 : f32
    %87 = vector.broadcast %cst_50 : f32 to vector<8x1xf32>
    %88 = arith.addf %84, %87 : vector<8x1xf32>
    %89 = math.rsqrt %88 : vector<8x1xf32>
    %90 = vector.broadcast %89 : vector<8x1xf32> to vector<8x256xf32>
    %91 = arith.mulf %86, %90 : vector<8x256xf32>
    %92 = tpu.concatenate %70, %91 in 1 : vector<8x256xf32>, vector<8x256xf32> -> vector<8x512xf32>
    %cst_51 = arith.constant 0.000000e+00 : f32
    %93 = vector.broadcast %cst_51 : f32 to vector<8x512xf32>
    %94 = arith.maximumf %92, %93 : vector<8x512xf32>
    %c0_52 = arith.constant 0 : index
    %c128_53 = arith.constant 128 : index
    %95 = vector.load %arg6[%c0_52, %c128_53] : memref<8x768xf32, #tpu.memory_space<vmem>>, vector<8x512xf32>
    tpu.vector_store %arg6[%c0_52, %c128_53], %94 {strides = array<i32>} : memref<8x768xf32, #tpu.memory_space<vmem>>, vector<8x512xf32>,
    %c0_54 = arith.constant 0 : index
    %c111_55 = arith.constant 111 : index
    %96 = vector.load %arg6[%c0_54, %c111_55] : memref<8x768xf32, #tpu.memory_space<vmem>>, vector<8x512xf32>
    %c0_56 = arith.constant 0 : index
    %c0_57 = arith.constant 0 : index
    %97 = vector.load %arg2[%c0_56, %c0_57] : memref<9x512xf32, #tpu.memory_space<vmem>>, vector<1x512xf32>
    %98 = vector.broadcast %97 : vector<1x512xf32> to vector<8x512xf32>
    %99 = arith.mulf %96, %98 : vector<8x512xf32>
    %c0_58 = arith.constant 0 : index
    %c0_59 = arith.constant 0 : index
    %100 = vector.load %arg7[%c0_58, %c0_59] : memref<72x512xf32, #tpu.memory_space<vmem>>, vector<8x512xf32>
    tpu.vector_store %arg7[%c0_58, %c0_59], %99 {strides = array<i32>} : memref<72x512xf32, #tpu.memory_space<vmem>>, vector<8x512xf32>,
    %c0_60 = arith.constant 0 : index
    %c112_61 = arith.constant 112 : index
    %101 = vector.load %arg6[%c0_60, %c112_61] : memref<8x768xf32, #tpu.memory_space<vmem>>, vector<8x512xf32>
    %c1_62 = arith.constant 1 : index
    %c0_63 = arith.constant 0 : index
    %102 = vector.load %arg2[%c1_62, %c0_63] : memref<9x512xf32, #tpu.memory_space<vmem>>, vector<1x512xf32>
    %103 = vector.broadcast %102 : vector<1x512xf32> to vector<8x512xf32>
    %104 = arith.mulf %101, %103 : vector<8x512xf32>
    %c8_64 = arith.constant 8 : index
    %c0_65 = arith.constant 0 : index
    %105 = vector.load %arg7[%c8_64, %c0_65] : memref<72x512xf32, #tpu.memory_space<vmem>>, vector<8x512xf32>
    tpu.vector_store %arg7[%c8_64, %c0_65], %104 {strides = array<i32>} : memref<72x512xf32, #tpu.memory_space<vmem>>, vector<8x512xf32>,
    %c0_66 = arith.constant 0 : index
    %c113_67 = arith.constant 113 : index
    %106 = vector.load %arg6[%c0_66, %c113_67] : memref<8x768xf32, #tpu.memory_space<vmem>>, vector<8x512xf32>
    %c2_68 = arith.constant 2 : index
    %c0_69 = arith.constant 0 : index
    %107 = vector.load %arg2[%c2_68, %c0_69] : memref<9x512xf32, #tpu.memory_space<vmem>>, vector<1x512xf32>
    %108 = vector.broadcast %107 : vector<1x512xf32> to vector<8x512xf32>
    %109 = arith.mulf %106, %108 : vector<8x512xf32>
    %c16_70 = arith.constant 16 : index
    %c0_71 = arith.constant 0 : index
    %110 = vector.load %arg7[%c16_70, %c0_71] : memref<72x512xf32, #tpu.memory_space<vmem>>, vector<8x512xf32>
    tpu.vector_store %arg7[%c16_70, %c0_71], %109 {strides = array<i32>} : memref<72x512xf32, #tpu.memory_space<vmem>>, vector<8x512xf32>,
    %c0_72 = arith.constant 0 : index
    %c127_73 = arith.constant 127 : index
    %111 = vector.load %arg6[%c0_72, %c127_73] : memref<8x768xf32, #tpu.memory_space<vmem>>, vector<8x512xf32>
    %c3_74 = arith.constant 3 : index
    %c0_75 = arith.constant 0 : index
    %112 = vector.load %arg2[%c3_74, %c0_75] : memref<9x512xf32, #tpu.memory_space<vmem>>, vector<1x512xf32>
    %113 = vector.broadcast %112 : vector<1x512xf32> to vector<8x512xf32>
    %114 = arith.mulf %111, %113 : vector<8x512xf32>
    %c24_76 = arith.constant 24 : index
    %c0_77 = arith.constant 0 : index
    %115 = vector.load %arg7[%c24_76, %c0_77] : memref<72x512xf32, #tpu.memory_space<vmem>>, vector<8x512xf32>
    tpu.vector_store %arg7[%c24_76, %c0_77], %114 {strides = array<i32>} : memref<72x512xf32, #tpu.memory_space<vmem>>, vector<8x512xf32>,
    %c32_78 = arith.constant 32 : index
    %c0_79 = arith.constant 0 : index
    %116 = vector.load %arg7[%c32_78, %c0_79] : memref<72x512xf32, #tpu.memory_space<vmem>>, vector<8x512xf32>
    tpu.vector_store %arg7[%c32_78, %c0_79], %94 {strides = array<i32>} : memref<72x512xf32, #tpu.memory_space<vmem>>, vector<8x512xf32>,
    %c0_80 = arith.constant 0 : index
    %c129_81 = arith.constant 129 : index
    %117 = vector.load %arg6[%c0_80, %c129_81] : memref<8x768xf32, #tpu.memory_space<vmem>>, vector<8x512xf32>
    %c5_82 = arith.constant 5 : index
    %c0_83 = arith.constant 0 : index
    %118 = vector.load %arg2[%c5_82, %c0_83] : memref<9x512xf32, #tpu.memory_space<vmem>>, vector<1x512xf32>
    %119 = vector.broadcast %118 : vector<1x512xf32> to vector<8x512xf32>
    %120 = arith.mulf %117, %119 : vector<8x512xf32>
    %c40_84 = arith.constant 40 : index
    %c0_85 = arith.constant 0 : index
    %121 = vector.load %arg7[%c40_84, %c0_85] : memref<72x512xf32, #tpu.memory_space<vmem>>, vector<8x512xf32>
    tpu.vector_store %arg7[%c40_84, %c0_85], %120 {strides = array<i32>} : memref<72x512xf32, #tpu.memory_space<vmem>>, vector<8x512xf32>,
    %c0_86 = arith.constant 0 : index
    %c143_87 = arith.constant 143 : index
    %122 = vector.load %arg6[%c0_86, %c143_87] : memref<8x768xf32, #tpu.memory_space<vmem>>, vector<8x512xf32>
    %c6_88 = arith.constant 6 : index
    %c0_89 = arith.constant 0 : index
    %123 = vector.load %arg2[%c6_88, %c0_89] : memref<9x512xf32, #tpu.memory_space<vmem>>, vector<1x512xf32>
    %124 = vector.broadcast %123 : vector<1x512xf32> to vector<8x512xf32>
    %125 = arith.mulf %122, %124 : vector<8x512xf32>
    %c48_90 = arith.constant 48 : index
    %c0_91 = arith.constant 0 : index
    %126 = vector.load %arg7[%c48_90, %c0_91] : memref<72x512xf32, #tpu.memory_space<vmem>>, vector<8x512xf32>
    tpu.vector_store %arg7[%c48_90, %c0_91], %125 {strides = array<i32>} : memref<72x512xf32, #tpu.memory_space<vmem>>, vector<8x512xf32>,
    %c0_92 = arith.constant 0 : index
    %c144_93 = arith.constant 144 : index
    %127 = vector.load %arg6[%c0_92, %c144_93] : memref<8x768xf32, #tpu.memory_space<vmem>>, vector<8x512xf32>
    %c7_94 = arith.constant 7 : index
    %c0_95 = arith.constant 0 : index
    %128 = vector.load %arg2[%c7_94, %c0_95] : memref<9x512xf32, #tpu.memory_space<vmem>>, vector<1x512xf32>
    %129 = vector.broadcast %128 : vector<1x512xf32> to vector<8x512xf32>
    %130 = arith.mulf %127, %129 : vector<8x512xf32>
    %c56_96 = arith.constant 56 : index
    %c0_97 = arith.constant 0 : index
    %131 = vector.load %arg7[%c56_96, %c0_97] : memref<72x512xf32, #tpu.memory_space<vmem>>, vector<8x512xf32>
    tpu.vector_store %arg7[%c56_96, %c0_97], %130 {strides = array<i32>} : memref<72x512xf32, #tpu.memory_space<vmem>>, vector<8x512xf32>,
    %c0_98 = arith.constant 0 : index
    %c145_99 = arith.constant 145 : index
    %132 = vector.load %arg6[%c0_98, %c145_99] : memref<8x768xf32, #tpu.memory_space<vmem>>, vector<8x512xf32>
    %c8_100 = arith.constant 8 : index
    %c0_101 = arith.constant 0 : index
    %133 = vector.load %arg2[%c8_100, %c0_101] : memref<9x512xf32, #tpu.memory_space<vmem>>, vector<1x512xf32>
    %134 = vector.broadcast %133 : vector<1x512xf32> to vector<8x512xf32>
    %135 = arith.mulf %132, %134 : vector<8x512xf32>
    %c64_102 = arith.constant 64 : index
    %c0_103 = arith.constant 0 : index
    %136 = vector.load %arg7[%c64_102, %c0_103] : memref<72x512xf32, #tpu.memory_space<vmem>>, vector<8x512xf32>
    tpu.vector_store %arg7[%c64_102, %c0_103], %135 {strides = array<i32>} : memref<72x512xf32, #tpu.memory_space<vmem>>, vector<8x512xf32>,
    %c0_104 = arith.constant 0 : index
    %c0_105 = arith.constant 0 : index
    %137 = vector.load %arg4[%c0_104, %c0_105] : memref<8x72xf32, #tpu.memory_space<vmem>>, vector<8x72xf32>
    %c0_106 = arith.constant 0 : index
    %c0_107 = arith.constant 0 : index
    %138 = vector.load %arg7[%c0_106, %c0_107] : memref<72x512xf32, #tpu.memory_space<vmem>>, vector<72x512xf32>
    %cst_108 = arith.constant dense<0.000000e+00> : vector<8x512xf32>
    %139 = tpu.matmul %137, %138, %cst_108 {dimension_numbers = #tpu.dot_dimension_numbers<[1], [0], [0], [1], [0, 0, 1, 1], [], []>} : vector<8x72xf32>, vector<72x512xf32>, vector<8x512xf32> -> vector<8x512xf32>
    %140 = vector.extract_strided_slice %139 {offsets = [0, 0], sizes = [8, 256], strides = [1, 1]} : vector<8x512xf32> to vector<8x256xf32>
    %cst_109 = arith.constant dense<0.000000e+00> : vector<8xf32>
    %141 = vector.multi_reduction <add>, %140, %cst_109 [1] : vector<8x256xf32> to vector<8xf32>
    %142 = vector.shape_cast %141 : vector<8xf32> to vector<8x1xf32>
    %cst_110 = arith.constant 3.906250e-03 : f32
    %143 = vector.broadcast %cst_110 : f32 to vector<8x1xf32>
    %144 = arith.mulf %142, %143 : vector<8x1xf32>
    %145 = arith.mulf %140, %140 : vector<8x256xf32>
    %cst_111 = arith.constant dense<0.000000e+00> : vector<8xf32>
    %146 = vector.multi_reduction <add>, %145, %cst_111 [1] : vector<8x256xf32> to vector<8xf32>
    %147 = vector.shape_cast %146 : vector<8xf32> to vector<8x1xf32>
    %cst_112 = arith.constant 3.906250e-03 : f32
    %148 = vector.broadcast %cst_112 : f32 to vector<8x1xf32>
    %149 = arith.mulf %147, %148 : vector<8x1xf32>
    %150 = arith.mulf %144, %144 : vector<8x1xf32>
    %151 = arith.subf %149, %150 : vector<8x1xf32>
    %cst_113 = arith.constant 0.000000e+00 : f32
    %152 = vector.broadcast %cst_113 : f32 to vector<8x1xf32>
    %153 = arith.maximumf %151, %152 : vector<8x1xf32>
    %154 = vector.broadcast %144 : vector<8x1xf32> to vector<8x256xf32>
    %155 = arith.subf %140, %154 : vector<8x256xf32>
    %cst_114 = arith.constant 9.99999974E-6 : f32
    %156 = vector.broadcast %cst_114 : f32 to vector<8x1xf32>
    %157 = arith.addf %153, %156 : vector<8x1xf32>
    %158 = math.rsqrt %157 : vector<8x1xf32>
    %159 = vector.broadcast %158 : vector<8x1xf32> to vector<8x256xf32>
    %160 = arith.mulf %155, %159 : vector<8x256xf32>
    %161 = vector.extract_strided_slice %139 {offsets = [0, 256], sizes = [8, 256], strides = [1, 1]} : vector<8x512xf32> to vector<8x256xf32>
    %cst_115 = arith.constant dense<0.000000e+00> : vector<8xf32>
    %162 = vector.multi_reduction <add>, %161, %cst_115 [1] : vector<8x256xf32> to vector<8xf32>
    %163 = vector.shape_cast %162 : vector<8xf32> to vector<8x1xf32>
    %cst_116 = arith.constant 3.906250e-03 : f32
    %164 = vector.broadcast %cst_116 : f32 to vector<8x1xf32>
    %165 = arith.mulf %163, %164 : vector<8x1xf32>
    %166 = arith.mulf %161, %161 : vector<8x256xf32>
    %cst_117 = arith.constant dense<0.000000e+00> : vector<8xf32>
    %167 = vector.multi_reduction <add>, %166, %cst_117 [1] : vector<8x256xf32> to vector<8xf32>
    %168 = vector.shape_cast %167 : vector<8xf32> to vector<8x1xf32>
    %cst_118 = arith.constant 3.906250e-03 : f32
    %169 = vector.broadcast %cst_118 : f32 to vector<8x1xf32>
    %170 = arith.mulf %168, %169 : vector<8x1xf32>
    %171 = arith.mulf %165, %165 : vector<8x1xf32>
    %172 = arith.subf %170, %171 : vector<8x1xf32>
    %cst_119 = arith.constant 0.000000e+00 : f32
    %173 = vector.broadcast %cst_119 : f32 to vector<8x1xf32>
    %174 = arith.maximumf %172, %173 : vector<8x1xf32>
    %175 = vector.broadcast %165 : vector<8x1xf32> to vector<8x256xf32>
    %176 = arith.subf %161, %175 : vector<8x256xf32>
    %cst_120 = arith.constant 9.99999974E-6 : f32
    %177 = vector.broadcast %cst_120 : f32 to vector<8x1xf32>
    %178 = arith.addf %174, %177 : vector<8x1xf32>
    %179 = math.rsqrt %178 : vector<8x1xf32>
    %180 = vector.broadcast %179 : vector<8x1xf32> to vector<8x256xf32>
    %181 = arith.mulf %176, %180 : vector<8x256xf32>
    %182 = tpu.concatenate %160, %181 in 1 : vector<8x256xf32>, vector<8x256xf32> -> vector<8x512xf32>
    %183 = arith.addf %4, %182 : vector<8x512xf32>
    %c0_121 = arith.constant 0 : index
    %c0_122 = arith.constant 0 : index
    %184 = vector.load %arg5[%c0_121, %c0_122] : memref<8x512xf32, #tpu.memory_space<vmem>>, vector<8x512xf32>
    tpu.vector_store %arg5[%c0_121, %c0_122], %183 {strides = array<i32>} : memref<8x512xf32, #tpu.memory_space<vmem>>, vector<8x512xf32>,
    return
  }
  func.func @transform_0(%arg0: i32) -> (i32, i32) {
    %c0_i32 = arith.constant 0 : i32
    %c0_i32_0 = arith.constant 0 : i32
    return %c0_i32, %arg0 : i32, i32
  }
  func.func @transform_1(%arg0: i32) -> (i32, i32) {
    %c0_i32 = arith.constant 0 : i32
    %c0_i32_0 = arith.constant 0 : i32
    %c0_i32_1 = arith.constant 0 : i32
    return %c0_i32, %c0_i32_0 : i32, i32
  }
  func.func @transform_2(%arg0: i32) -> (i32, i32) {
    %c0_i32 = arith.constant 0 : i32
    %c0_i32_0 = arith.constant 0 : i32
    %c0_i32_1 = arith.constant 0 : i32
    return %c0_i32, %c0_i32_0 : i32, i32
  }
  func.func @transform_3(%arg0: i32) -> (i32, i32) {
    %c0_i32 = arith.constant 0 : i32
    %c0_i32_0 = arith.constant 0 : i32
    %c0_i32_1 = arith.constant 0 : i32
    return %c0_i32, %c0_i32_0 : i32, i32
  }
  func.func @transform_4(%arg0: i32) -> (i32, i32) {
    %c0_i32 = arith.constant 0 : i32
    %c0_i32_0 = arith.constant 0 : i32
    return %c0_i32, %arg0 : i32, i32
  }
}

</mosaic_0001>

<bundles_post_ra>
// kernel: tpu_custom_call.1
= control target key start
LH: loop header
LB: loop body
LE: loop exit
PB: predicated region body
PF: predicated region fallthrough
CT: control target
= control target key end

     0   :  { %9 = vsyncpa [#allocation5], 0  ;;  %s2651_s0 = inlined_call_operand.hbm [shape: f32[8,512], index: 0, kind: input, shape index: {}]   ;;  %s2652_s1 = inlined_call_operand.hbm [shape: f32[9,512], index: 1, kind: input, shape index: {}]   ;;  %s2653_s2 = inlined_call_operand.hbm [shape: f32[8,72], index: 2, kind: input, shape index: {}]   ;;  %s2654_s3 = inlined_call_operand.vmem [shape: f32[8,72], index: 3, kind: input, shape index: {}]   ;;  %s2655_s4 = inlined_call_operand.hbm [shape: f32[8,512], index: 4, kind: output, shape index: {}]  }
   0x1   :  { %10 = vsyncpa [#allocation8], 0 }
   0x2   :  { %11 = vsyncpa [#allocation6], 0  ;;  %s2026_s15 = smov [#allocation7]   ;;  %s1932_s19 = scalar_lea.hbm %s2652_s1, 1024 }
   0x3   :  { %s27_s16 = sshll.u32 %s2026_s15, 4  ;;  %p1933_p0 = scmp.ne.s32.totalorder %s2652_s1, %s1932_s19  ;;  %s28_s16 = int_to_ptr.vmem [resolvable:$true] %s27_s16 }
   0x4   :  { %p1936_p1 = scmp.lt.u32.totalorder %s1932_s19, %s2652_s1 }
   0x6   :  { %p1938_p2 = pnand %p1936_p1, %p1933_p0 }
   0x8   :  { %1941 = shalt.err (!%p1938_p2)
}
   0x9   :  { %s1942_s24 = scalar_lea.vmem %s28_s16, 1024  ;;  %p1947_p4 = scmp.lt.s32.totalorder %s28_s16, %s28_s16 }
   0xa   :  { %p1943_p3 = scmp.ne.s32.totalorder %s28_s16, %s1942_s24  ;;  %p1948_p5 = scmp.lt.s32.totalorder %s1942_s24, %s1942_s24 }
   0xc   :  { %p1949_p6 = por %p1948_p5, %p1947_p4 }
   0xe   :  { %p1950_p7 = pnand %p1949_p6, %p1943_p3 }
  0x10   :  { %1953 = shalt.err (!%p1950_p7)
}
  0x11   :  { %s2027_s25 = smov 512   ;;  %s2028_s26 = smov 32  }
  0x12   :  { %33 = dma.hbm_to_vmem [thread:$0]  %s2652_s1, 1024, %s28_s16, [#allocation8], %s2027_s25, %s2027_s25, %s2028_s26  }
  0x13   :  { %s2029_s29 = smov [#allocation4]   ;;  %s2030_s5 = smov [#allocation9]  }
  0x14   :  { %s18_s30 = sshll.u32 %s2029_s29, 4  ;;  %s40_s6 = sshll.u32 %s2030_s5, 4  ;;  %s19_s30 = int_to_ptr.vmem [resolvable:$true] %s18_s30  ;;  %s41_s6 = int_to_ptr.vmem [resolvable:$true] %s40_s6 }
  0x15   :  { %s1954_s9 = scalar_lea.hbm %s2651_s0, 512 }
  0x16   :  { %p1955_p8 = scmp.ne.s32.totalorder %s2651_s0, %s1954_s9  ;;  %p1958_p9 = scmp.lt.u32.totalorder %s1954_s9, %s2651_s0 }
  0x18   :  { %p1960_p10 = pnand %p1958_p9, %p1955_p8 }
  0x1a   :  { %1963 = shalt.err (!%p1960_p10)
}
  0x1b   :  { %s1964_s1 = scalar_lea.vmem %s19_s30, 512  ;;  %p1969_p12 = scmp.lt.s32.totalorder %s19_s30, %s19_s30 }
  0x1c   :  { %p1965_p11 = scmp.ne.s32.totalorder %s19_s30, %s1964_s1  ;;  %p1970_p13 = scmp.lt.s32.totalorder %s1964_s1, %s1964_s1 }
  0x1e   :  { %p1971_p0 = por %p1970_p13, %p1969_p12 }
  0x20   :  { %p1972_p1 = pnand %p1971_p0, %p1965_p11 }
  0x22   :  { %1975 = shalt.err (!%p1972_p1)
}
  0x23   :  { %21 = dma.hbm_to_vmem [thread:$0]  %s2651_s0, 512, %s19_s30, [#allocation5]  }
  0x24   :  { %s1976_s18 = scalar_lea.hbm %s2653_s2, 128 }
  0x25   :  { %p1977_p2 = scmp.ne.s32.totalorder %s2653_s2, %s1976_s18  ;;  %p1980_p3 = scmp.lt.u32.totalorder %s1976_s18, %s2653_s2 }
  0x27   :  { %p1982_p4 = pnand %p1980_p3, %p1977_p2 }
  0x29   :  { %1985 = shalt.err (!%p1982_p4)
}
  0x2a   :  { %s1986_s23 = scalar_lea.vmem %s41_s6, 128  ;;  %p1991_p6 = scmp.lt.s32.totalorder %s41_s6, %s41_s6 }
  0x2b   :  { %p1987_p5 = scmp.ne.s32.totalorder %s41_s6, %s1986_s23  ;;  %p1992_p7 = scmp.lt.s32.totalorder %s1986_s23, %s1986_s23 }
  0x2d   :  { %p1993_p8 = por %p1992_p7, %p1991_p6 }
  0x2f   :  { %p1994_p9 = pnand %p1993_p8, %p1987_p5 }
  0x31   :  { %1997 = shalt.err (!%p1994_p9)
}
  0x32   :  { %43 = dma.hbm_to_vmem [thread:$0]  %s2653_s2, 128, %s41_s6, [#allocation8]  }
  0x33   :  { %2020 = dma.done.wait [#allocation5], 512  }
  0x34   :  { %2021 = vsyncadd [#allocation5], 4294966784 }
  0x35   :  { %2022 = dma.done.wait [#allocation8], 1152  }
  0x36   :  { %2023 = vsyncadd [#allocation8], 4294966144  ;;  %v72_v0 = vlaneseq  ;;  %v70_v6 = vld [vmem:[#allocation7] ss:$8 sm:$0xf]  ;;  %s2031_s2 = smov 111  }
  0x37   :  { %v144_v11 = vld [vmem:[#allocation7 + $0x1] ss:$8 sm:$0xf]  ;;  %s2032_s25 = smov 112   ;;  %s2033_s26 = smov 113   ;;  %vm96_vm0 = vcmask 908288  }
  0x38   :  { %v73_v1 = vshrl.u32 %v72_v0, 7  ;;  %v218_v16 = vld [vmem:[#allocation7 + $0x2] ss:$8 sm:$0xf]  ;;  %s2034_s27 = smov 127   ;;  %s2035_s28 = smov 1  }
  0x39   :  { %v292_v21 = vld [vmem:[#allocation7 + $0x3] ss:$8 sm:$0xf]  ;;  %v370_v26 = vld [vmem:[#allocation7 + $0x5] ss:$8 sm:$0xf] }
  0x3a   :  { %v2102_v2 = vsub.s32 2, %v73_v1  ;;  %v2104_v3 = vsub.s32 0, %v73_v1  ;;  %v2106_v4 = vsub.s32 3, %v73_v1  ;;  %v2108_v5 = vsub.s32 1, %v73_v1  ;;  %s2036_s29 = smov 15   ;;  %s2037_s30 = smov 16  }
  0x3b   :  { %v442_v31 = vld [vmem:[#allocation7 + $0x6] ss:$8 sm:$0xf]  ;;  %v514_v36 = vld [vmem:[#allocation7 + $0x7] ss:$8 sm:$0xf] }
  0x3c   :  { %v83_v7 = vrot.slane %v70_v6, %v2102_v2  ;;  %v75_v8 = vrot.slane %v70_v6, %v2104_v3  ;;  %v87_v9 = vrot.slane %v70_v6, %v2106_v4  ;;  %v79_v10 = vrot.slane %v70_v6, %v2108_v5  ;;  %v586_v41 = vld [vmem:[#allocation7 + $0x20] ss:$8 sm:$0xf]  ;;  %s2038_s5 = smov 17  }
  0x3d   :  { %v153_v12 = vrot.slane %v144_v11, %v2108_v5  ;;  %v149_v13 = vrot.slane %v144_v11, %v2104_v3  ;;  %v161_v14 = vrot.slane %v144_v11, %v2106_v4  ;;  %v157_v15 = vrot.slane %v144_v11, %v2102_v2  ;;  %v2190_v6 = vld [vmem:[#allocation4] sm:$0xff] }
  0x3e   :  { %92 = vrot.lane.b32.xlu1 %v83_v7, %s2031_s2  ;;  %88 = vrot.lane.b32.xlu0 %v75_v8, %s2031_s2  ;;  %v227_v17 = vrot.slane %v218_v16, %v2108_v5  ;;  %v223_v18 = vrot.slane %v218_v16, %v2104_v3  ;;  %v235_v19 = vrot.slane %v218_v16, %v2106_v4  ;;  %vm170_vm1 = vcmask 916480  }
  0x3f   :  { %v231_v20 = vrot.slane %v218_v16, %v2102_v2  ;;  %v301_v22 = vrot.slane %v292_v21, %v2108_v5  ;;  %v297_v23 = vrot.slane %v292_v21, %v2104_v3  ;;  %v309_v24 = vrot.slane %v292_v21, %v2106_v4 }
  0x40   :  { %v305_v25 = vrot.slane %v292_v21, %v2102_v2  ;;  %v379_v27 = vrot.slane %v370_v26, %v2108_v5  ;;  %v375_v28 = vrot.slane %v370_v26, %v2104_v3  ;;  %v387_v29 = vrot.slane %v370_v26, %v2106_v4 }
  0x41   :  { %v383_v30 = vrot.slane %v370_v26, %v2102_v2  ;;  %v451_v32 = vrot.slane %v442_v31, %v2108_v5  ;;  %v447_v33 = vrot.slane %v442_v31, %v2104_v3  ;;  %v459_v34 = vrot.slane %v442_v31, %v2106_v4 }
  0x42   :  { %94 = vrot.lane.b32.xlu1 %v87_v9, %s2031_s2  ;;  %90 = vrot.lane.b32.xlu0 %v79_v10, %s2031_s2  ;;  %v455_v35 = vrot.slane %v442_v31, %v2102_v2  ;;  %v523_v37 = vrot.slane %v514_v36, %v2108_v5  ;;  %v519_v38 = vrot.slane %v514_v36, %v2104_v3  ;;  %vm244_vm2 = vcmask 924672  }
  0x43   :  { %v527_v39 = vrot.slane %v514_v36, %v2102_v2  ;;  %v531_v40 = vrot.slane %v514_v36, %v2106_v4  ;;  %v591_v42 = vrot.slane %v586_v41, %v2104_v3  ;;  %v595_v43 = vrot.slane %v586_v41, %v2108_v5 }
  0x44   :  { %v599_v44 = vrot.slane %v586_v41, %v2102_v2  ;;  %v603_v45 = vrot.slane %v586_v41, %v2106_v4  ;;  %vm318_vm3 = vcmask 1039360   ;;  %vm347_vm4 = vcmask 7168  }
  0x45   :  { %vm273_vm5 = vcmask 121856   ;;  %vm199_vm6 = vcmask 130048   ;;  %vm125_vm7 = vcmask 138240   ;;  %vm689_vm8 = vcmask 588800  }
  0x46   :  { %164 = vrot.lane.b32.xlu1 %v153_v12, %s2032_s25  ;;  %162 = vrot.lane.b32.xlu0 %v149_v13, %s2032_s25  ;;  %v2202_v13 = vld [vmem:[#allocation4 + $0x10] sm:$0xff] }
  0x4a   :  { %168 = vrot.lane.b32.xlu1 %v161_v14, %s2032_s25  ;;  %166 = vrot.lane.b32.xlu0 %v157_v15, %s2032_s25  ;;  %v2204_v14 = vld [vmem:[#allocation4 + $0x18] sm:$0xff] }
  0x4e   :  { %238 = vrot.lane.b32.xlu1 %v227_v17, %s2033_s26  ;;  %236 = vrot.lane.b32.xlu0 %v223_v18, %s2033_s26 }
  0x52   :  { %242 = vrot.lane.b32.xlu1 %v235_v19, %s2033_s26  ;;  %240 = vrot.lane.b32.xlu0 %v231_v20, %s2033_s26 }
  0x56   :  { %312 = vrot.lane.b32.xlu1 %v301_v22, %s2034_s27  ;;  %310 = vrot.lane.b32.xlu0 %v297_v23, %s2034_s27  ;;  %v2214_v23 = vld [vmem:[#allocation4 + $0x8] sm:$0xff] }
  0x5a   :  { %316 = vrot.lane.b32.xlu1 %v309_v24, %s2034_s27  ;;  %314 = vrot.lane.b32.xlu0 %v305_v25, %s2034_s27 }
  0x5e   :  { %390 = vrot.lane.b32.xlu1 %v379_v27, %s2035_s28  ;;  %388 = vrot.lane.b32.xlu0 %v375_v28, %s2035_s28 }
  0x62   :  { %394 = vrot.lane.b32.xlu1 %v387_v29, %s2035_s28  ;;  %392 = vrot.lane.b32.xlu0 %v383_v30, %s2035_s28 }
  0x66   :  { %462 = vrot.lane.b32.xlu1 %v451_v32, %s2036_s29  ;;  %460 = vrot.lane.b32.xlu0 %v447_v33, %s2036_s29 }
  0x6a   :  { %466 = vrot.lane.b32.xlu1 %v459_v34, %s2036_s29  ;;  %464 = vrot.lane.b32.xlu0 %v455_v35, %s2036_s29 }
  0x6e   :  { %534 = vrot.lane.b32.xlu1 %v523_v37, %s2037_s30  ;;  %532 = vrot.lane.b32.xlu0 %v519_v38, %s2037_s30 }
  0x72   :  { %536 = vrot.lane.b32.xlu0 %v527_v39, %s2037_s30  ;;  %538 = vrot.lane.b32.xlu1 %v531_v40, %s2037_s30 }
  0x76   :  { %604 = vrot.lane.b32.xlu0 %v591_v42, %s2038_s5  ;;  %606 = vrot.lane.b32.xlu1 %v595_v43, %s2038_s5 }
  0x7a   :  { %608 = vrot.lane.b32.xlu0 %v599_v44, %s2038_s5  ;;  %610 = vrot.lane.b32.xlu1 %v603_v45, %s2038_s5 }
  0xb0   :  { %v93_v46 = vpop.permute.xlu1 %92  ;;  %v89_v47 = vpop.permute.xlu0 %88 }
  0xb1   :  { %v105_v48 = vmul.f32 0.0, %v89_v47 }
  0xb3   :  { %115 = vrot.lane.b32.xlu0 %v105_v48, %s2038_s5 }
  0xb4   :  { %v95_v49 = vpop.permute.xlu1 %94  ;;  %v91_v50 = vpop.permute.xlu0 %90 }
  0xb5   :  { %v99_v12 = vsel %vm96_vm0, %v93_v46, %v95_v49  ;;  %v109_v17 = vmul.f32 %v95_v49, %v2204_v14  ;;  %v97_v21 = vsel %vm96_vm0, %v89_v47, %v91_v50  ;;  %v98_v24 = vsel %vm96_vm0, %v91_v50, %v93_v46 }
  0xb6   :  { %v108_v16 = vmul.f32 %v99_v12, %v2202_v13  ;;  %v106_v30 = vmul.f32 %v97_v21, %v2190_v6  ;;  %v107_v31 = vmul.f32 %v98_v24, %v2214_v23 }
  0xb8   :  { %v165_v51 = vpop.permute.xlu1 %164  ;;  %v163_v52 = vpop.permute.xlu0 %162  ;;  %v1785_v27 = vpack.i.bf16 %v109_v17, %v108_v16  ;;  %v1780_v45 = vpack.i.bf16 %v107_v31, %v106_v30 }
  0xb9   :  { %v179_v53 = vmul.f32 0.0, %v163_v52  ;;  %v171_v39 = vsel %vm170_vm1, %v163_v52, %v165_v51 }
  0xba   :  { %v180_v46 = vmul.f32 %v171_v39, %v2190_v6 }
  0xbb   :  { %189 = vrot.lane.b32.xlu1 %v179_v53, %s2037_s30 }
  0xbc   :  { %v169_v54 = vpop.permute.xlu1 %168  ;;  %v167_v55 = vpop.permute.xlu0 %166 }
  0xbd   :  { %v173_v20 = vsel %vm170_vm1, %v167_v55, %v169_v54  ;;  %v183_v25 = vmul.f32 %v169_v54, %v2204_v14  ;;  %v172_v32 = vsel %vm170_vm1, %v165_v51, %v167_v55 }
  0xbe   :  { %v182_v26 = vmul.f32 %v173_v20, %v2202_v13  ;;  %v181_v40 = vmul.f32 %v172_v32, %v2214_v23 }
  0xc0   :  { %v2176_v56 = vpop.permute.xlu1 %238  ;;  %v2178_v57 = vpop.permute.xlu0 %236  ;;  %v1795_v37 = vpack.i.bf16 %v183_v25, %v182_v26  ;;  %v1790_v50 = vpack.i.bf16 %v181_v40, %v180_v46 }
  0xc1   :  { %v253_v58 = vmul.f32 0.0, %v2178_v57  ;;  %v245_v49 = vsel %vm244_vm2, %v2178_v57, %v2176_v56 }
  0xc3   :  { %263 = vrot.lane.b32.xlu0 %v253_v58, %s2036_s29 }
  0xc4   :  { %v243_v59 = vpop.permute.xlu1 %242  ;;  %v241_v60 = vpop.permute.xlu0 %240 }
  0xc5   :  { %v247_v28 = vsel %vm244_vm2, %v241_v60, %v243_v59  ;;  %v257_v34 = vmul.f32 %v243_v59, %v2204_v14  ;;  %v246_v47 = vsel %vm244_vm2, %v2176_v56, %v241_v60  ;;  %v254_v60 = vmul.f32 %v245_v49, %v2190_v6  ;;  %v957_v49 = vld [vmem:[#allocation7 + $0x1] ss:$8 sm:$0xf] }
  0xc6   :  { %v256_v35 = vmul.f32 %v247_v28, %v2202_v13  ;;  %v255_v51 = vmul.f32 %v246_v47, %v2214_v23 }
  0xc8   :  { %v2182_v61 = vpop.permute.xlu1 %312  ;;  %v2184_v62 = vpop.permute.xlu0 %310  ;;  %v1805_v44 = vpack.i.bf16 %v257_v34, %v256_v35 }
  0xc9   :  { %v327_v63 = vmul.f32 0.0, %v2184_v62  ;;  %v319_v56 = vsel %vm318_vm3, %v2184_v62, %v2182_v61 }
  0xca   :  { %v328_v17 = vmul.f32 %v319_v56, %v2190_v6 }
  0xcb   :  { %337 = vrot.lane.b32.xlu1 %v327_v63, %s2035_s28 }
  0xcc   :  { %v317_v0 = vpop.permute.xlu1 %316  ;;  %v2188_v1 = vpop.permute.xlu0 %314 }
  0xcd   :  { %v321_v38 = vsel %vm318_vm3, %v2188_v1, %v317_v0  ;;  %v331_v41 = vmul.f32 %v317_v0, %v2204_v14  ;;  %v320_v58 = vsel %vm318_vm3, %v2182_v61, %v2188_v1 }
  0xce   :  { %v330_v42 = vmul.f32 %v321_v38, %v2202_v13  ;;  %v329_v0 = vmul.f32 %v320_v58, %v2214_v23  ;;  %v2039_v38 = vmov 0.0  }
  0xcf   :  { %757 = vmatprep.mubr.f32.mxu0 %v2039_v38  ;;  %828 = vmatprep.mubr.f32.mxu1 %v2039_v38 }
  0xd0   :  { %v2192_v7 = vpop.permute.xlu1 %390  ;;  %v2194_v8 = vpop.permute.xlu0 %388  ;;  %v1815_v54 = vpack.i.bf16 %v331_v41, %v330_v42  ;;  %v1810_v21 = vpack.i.bf16 %v329_v0, %v328_v17  ;;  %v886_v42 = vld [vmem:[#allocation7] ss:$8 sm:$0xf] }
  0xd1   :  { %v404_v9 = vmul.f32 %v2194_v8, %v2190_v6  ;;  %v396_v62 = vsel %vm347_vm4, %v2194_v8, %v2192_v7  ;;  %v899_v47 = vrot.slane %v886_v42, %v2102_v2 }
  0xd2   :  { %v405_v26 = vmul.f32 %v396_v62, %v2214_v23 }
  0xd3   :  { %414 = vrot.lane.b32.xlu0 %v404_v9, %s2034_s27 }
  0xd4   :  { %v395_v10 = vpop.permute.xlu1 %394  ;;  %v2199_v11 = vpop.permute.xlu0 %392 }
  0xd5   :  { %v398_v48 = vsel %vm347_vm4, %v2199_v11, %v395_v10  ;;  %v408_v52 = vmul.f32 0.0, %v395_v10  ;;  %v1800_v10 = vpack.i.bf16 %v255_v51, %v254_v60  ;;  %v397_v12 = vsel %vm347_vm4, %v2192_v7, %v2199_v11 }
  0xd6   :  { %v407_v53 = vmul.f32 %v398_v48, %v2204_v14  ;;  %v406_v11 = vmul.f32 %v397_v12, %v2202_v13  ;;  %v895_v48 = vrot.slane %v886_v42, %v2108_v5  ;;  %v962_v51 = vrot.slane %v957_v49, %v2104_v3 }
  0xd8   :  { %v461_v15 = vpop.permute.xlu0 %460  ;;  %v463_v18 = vpop.permute.xlu1 %462  ;;  %v1825_v9 = vpack.i.bf16 %v408_v52, %v407_v53  ;;  %v1820_v31 = vpack.i.bf16 %v406_v11, %v405_v26  ;;  %v966_v52 = vrot.slane %v957_v49, %v2108_v5  ;;  %v970_v53 = vrot.slane %v957_v49, %v2102_v2 }
  0xd9   :  { %v476_v19 = vmul.f32 %v461_v15, %v2190_v6  ;;  %v468_v57 = vsel %vm273_vm5, %v461_v15, %v463_v18 }
  0xdb   :  { %486 = vrot.lane.b32.xlu1 %v476_v19, %s2033_s26  ;;  %v477_v19 = vmul.f32 %v468_v57, %v2214_v23 }
  0xdc   :  { %v2212_v22 = vpop.permute.xlu0 %464  ;;  %v2220_v29 = vpop.permute.xlu1 %466 }
  0xdd   :  { %v469_v59 = vsel %vm273_vm5, %v463_v18, %v2212_v22  ;;  %v470_v25 = vsel %vm273_vm5, %v2212_v22, %v2220_v29  ;;  %v480_v8 = vmul.f32 0.0, %v2220_v29 }
  0xde   :  { %v478_v1 = vmul.f32 %v469_v59, %v2202_v13  ;;  %v479_v28 = vmul.f32 %v470_v25, %v2204_v14 }
  0xdf   :  { %1786 = vrot.lane.b32.xlu1 %v1785_v27, %s2038_s5 }
  0xe0   :  { %v533_v33 = vpop.permute.xlu0 %532  ;;  %v535_v43 = vpop.permute.xlu1 %534  ;;  %v1830_v20 = vpack.i.bf16 %v478_v1, %v477_v19  ;;  %v1835_v29 = vpack.i.bf16 %v480_v8, %v479_v28 }
  0xe1   :  { %v548_v36 = vmul.f32 %v533_v33, %v2190_v6  ;;  %v540_v15 = vsel %vm199_vm6, %v533_v33, %v535_v43 }
  0xe2   :  { %v549_v27 = vmul.f32 %v540_v15, %v2214_v23 }
  0xe3   :  { %1796 = vrot.lane.b32.xlu1 %v1795_v37, %s2037_s30  ;;  %558 = vrot.lane.b32.xlu0 %v548_v36, %s2032_s25 }
  0xe4   :  { %v539_v55 = vpop.permute.xlu1 %538  ;;  %v537_v63 = vpop.permute.xlu0 %536 }
  0xe5   :  { %v541_v16 = vsel %vm199_vm6, %v535_v43, %v537_v63  ;;  %v542_v33 = vsel %vm199_vm6, %v537_v63, %v539_v55  ;;  %v552_v37 = vmul.f32 0.0, %v539_v55  ;;  %v974_v55 = vrot.slane %v957_v49, %v2106_v4  ;;  %v1099_v63 = vld [vmem:[#allocation7 + $0x3] ss:$8 sm:$0xf] }
  0xe6   :  { %v550_v18 = vmul.f32 %v541_v16, %v2202_v13  ;;  %v551_v36 = vmul.f32 %v542_v33, %v2204_v14  ;;  %v1104_v57 = vrot.slane %v1099_v63, %v2104_v3  ;;  %v1108_v0 = vrot.slane %v1099_v63, %v2108_v5 }
  0xe7   :  { %1806 = vrot.lane.b32.xlu1 %v1805_v44, %s2036_s29  ;;  %1781 = vrot.lane.b32.xlu0 %v1780_v45, %s2038_s5  ;;  %v891_v45 = vrot.slane %v886_v42, %v2104_v3  ;;  %v1112_v1 = vrot.slane %v1099_v63, %v2102_v2 }
  0xe8   :  { %v607_v61 = vpop.permute.xlu1 %606  ;;  %v605_v24 = vpop.permute.xlu0 %604  ;;  %v1840_v30 = vpack.i.bf16 %v550_v18, %v549_v27  ;;  %v1845_v40 = vpack.i.bf16 %v552_v37, %v551_v36 }
  0xe9   :  { %v612_v7 = vsel %vm125_vm7, %v605_v24, %v607_v61  ;;  %v620_v43 = vmul.f32 %v605_v24, %v2190_v6 }
  0xea   :  { %v621_v22 = vmul.f32 %v612_v7, %v2214_v23 }
  0xeb   :  { %1816 = vrot.lane.b32.xlu1 %v1815_v54, %s2035_s28  ;;  %1791 = vrot.lane.b32.xlu0 %v1790_v50, %s2037_s30  ;;  %v903_v50 = vrot.slane %v886_v42, %v2106_v4  ;;  %v1028_v54 = vld [vmem:[#allocation7 + $0x2] ss:$8 sm:$0xf] }
  0xec   :  { %v611_v32 = vpop.permute.xlu1 %610  ;;  %v609_v34 = vpop.permute.xlu0 %608  ;;  %v1033_v58 = vrot.slane %v1028_v54, %v2104_v3  ;;  %v1037_v59 = vrot.slane %v1028_v54, %v2108_v5  ;;  %v1041_v60 = vrot.slane %v1028_v54, %v2102_v2  ;;  %v1045_v56 = vrot.slane %v1028_v54, %v2106_v4 }
  0xed   :  { %v614_v35 = vsel %vm125_vm7, %v609_v34, %v611_v32  ;;  %v613_v41 = vsel %vm125_vm7, %v607_v61, %v609_v34  ;;  %v624_v46 = vmul.f32 0.0, %v611_v32 }
  0xee   :  { %v623_v39 = vmul.f32 %v614_v35, %v2204_v14  ;;  %v622_v44 = vmul.f32 %v613_v41, %v2202_v13 }
  0xef   :  { %1826 = vrot.lane.b32.xlu1 %v1825_v9, %s2034_s27  ;;  %1801 = vrot.lane.b32.xlu0 %v1800_v10, %s2036_s29  ;;  %v2334_v9 = vld [vmem:[#allocation7 + $0x5] ss:$8 sm:$0xf]  ;;  %v1116_v10 = vrot.slane %v1099_v63, %v2106_v4 }
  0xf0   :  { %v1179_v12 = vrot.slane %v2334_v9, %v2104_v3  ;;  %v1183_v16 = vrot.slane %v2334_v9, %v2108_v5 }
  0xf3   :  { %1831 = vrot.lane.b32.xlu1 %v1830_v20, %s2033_s26  ;;  %1811 = vrot.lane.b32.xlu0 %v1810_v21, %s2035_s28 }
  0xf7   :  { %1841 = vrot.lane.b32.xlu1 %v1840_v30, %s2032_s25  ;;  %1821 = vrot.lane.b32.xlu0 %v1820_v31, %s2034_s27 }
  0xfb   :  { %632 = vrot.lane.b32.xlu1 %v621_v22, %s2031_s2  ;;  %1836 = vrot.lane.b32.xlu0 %v1835_v29, %s2033_s26 }
  0xff   :  { %636 = vrot.lane.b32.xlu1 %v623_v39, %s2031_s2  ;;  %1846 = vrot.lane.b32.xlu0 %v1845_v40, %s2032_s25 }
 0x103   :  { %630 = vrot.lane.b32.xlu1 %v620_v43, %s2031_s2  ;;  %634 = vrot.lane.b32.xlu0 %v622_v44, %s2031_s2 }
 0x107   :  { %638 = vrot.lane.b32.xlu0 %v624_v46, %s2031_s2  ;;  %904 = vrot.lane.b32.xlu1 %v891_v45, %s2031_s2 }
 0x10b   :  { %908 = vrot.lane.b32.xlu1 %v899_v47, %s2031_s2  ;;  %906 = vrot.lane.b32.xlu0 %v895_v48, %s2031_s2 }
 0x10f   :  { %910 = vrot.lane.b32.xlu1 %v903_v50, %s2031_s2  ;;  %975 = vrot.lane.b32.xlu0 %v962_v51, %s2032_s25 }
 0x113   :  { %977 = vrot.lane.b32.xlu1 %v966_v52, %s2032_s25  ;;  %979 = vrot.lane.b32.xlu0 %v970_v53, %s2032_s25 }
 0x117   :  { %981 = vrot.lane.b32.xlu1 %v974_v55, %s2032_s25  ;;  %1046 = vrot.lane.b32.xlu0 %v1033_v58, %s2033_s26 }
 0x11b   :  { %1048 = vrot.lane.b32.xlu1 %v1037_v59, %s2033_s26  ;;  %1050 = vrot.lane.b32.xlu0 %v1041_v60, %s2033_s26 }
 0x11f   :  { %1052 = vrot.lane.b32.xlu1 %v1045_v56, %s2033_s26  ;;  %1117 = vrot.lane.b32.xlu0 %v1104_v57, %s2034_s27 }
 0x123   :  { %1119 = vrot.lane.b32.xlu1 %v1108_v0, %s2034_s27  ;;  %1121 = vrot.lane.b32.xlu0 %v1112_v1, %s2034_s27 }
 0x125   :  { %v116_v19 = vpop.permute.xlu0 %115 }
 0x127   :  { %1123 = vrot.lane.b32.xlu1 %v1116_v10, %s2034_s27  ;;  %1192 = vrot.lane.b32.xlu0 %v1179_v12, %s2035_s28 }
 0x12b   :  { %1194 = vrot.lane.b32.xlu1 %v1183_v16, %s2035_s28 }
 0x12d   :  { %v190_v17 = vpop.permute.xlu1 %189 }
 0x135   :  { %v264_v62 = vpop.permute.xlu0 %263 }
 0x13d   :  { %v338_v61 = vpop.permute.xlu1 %337 }
 0x145   :  { %v2348_v11 = vpop.permute.xlu0 %414 }
 0x14d   :  { %v2346_v15 = vpop.permute.xlu1 %486 }
 0x151   :  { %v1787_v18 = vpop.permute.xlu1 %1786 }
 0x152   :  { %v1789_v20 = vunpack.i.h.bf16 %v1787_v18  ;;  %v1788_v21 = vunpack.i.l.bf16 %v1787_v18 }
 0x154   :  { %v129_v7 = vsel %vm125_vm7, %v1788_v21, %v1789_v20 }
 0x155   :  { %v1797_v24 = vpop.permute.xlu1 %1796  ;;  %v2350_v25 = vpop.permute.xlu0 %558 }
 0x156   :  { %v1799_v26 = vunpack.i.h.bf16 %v1797_v24  ;;  %v1798_v27 = vunpack.i.l.bf16 %v1797_v24 }
 0x158   :  { %v203_v8 = vsel %vm199_vm6, %v1798_v27, %v1799_v26 }
 0x159   :  { %v1807_v28 = vpop.permute.xlu1 %1806  ;;  %v1782_v30 = vpop.permute.xlu0 %1781  ;;  %v1717_v31 = vpack.c.bf16 %v203_v8, %v129_v7 }
 0x15a   :  { %v1809_v32 = vunpack.i.h.bf16 %v1807_v28  ;;  %v1808_v33 = vunpack.i.l.bf16 %v1807_v28  ;;  %v1784_v22 = vunpack.i.h.bf16 %v1782_v30  ;;  %v1783_v34 = vunpack.i.l.bf16 %v1782_v30 }
 0x15b   :  { %1718 = vmatprep.subr.bf16.mxu1 %v1717_v31 }
 0x15c   :  { %v127_v41 = vsel %vm125_vm7, %v1783_v34, %v1784_v22  ;;  %v128_v42 = vsel %vm125_vm7, %v1784_v22, %v1788_v21  ;;  %v126_v43 = vsel %vm125_vm7, %v116_v19, %v1783_v34  ;;  %v277_v44 = vsel %vm273_vm5, %v1808_v33, %v1809_v32 }
 0x15d   :  { %v1817_v35 = vpop.permute.xlu1 %1816  ;;  %v1792_v36 = vpop.permute.xlu0 %1791 }
 0x15e   :  { %v1819_v37 = vunpack.i.h.bf16 %v1817_v35  ;;  %v1818_v29 = vunpack.i.l.bf16 %v1817_v35  ;;  %v1794_v39 = vunpack.i.h.bf16 %v1792_v36  ;;  %v1793_v40 = vunpack.i.l.bf16 %v1792_v36 }
 0x160   :  { %v201_v45 = vsel %vm199_vm6, %v1793_v40, %v1794_v39  ;;  %v202_v46 = vsel %vm199_vm6, %v1794_v39, %v1798_v27  ;;  %v200_v47 = vsel %vm199_vm6, %v190_v17, %v1793_v40  ;;  %v351_v48 = vsel %vm347_vm4, %v1818_v29, %v1819_v37 }
 0x161   :  { %v1827_v49 = vpop.permute.xlu1 %1826  ;;  %v1802_v50 = vpop.permute.xlu0 %1801  ;;  %v1701_v51 = vpack.c.bf16 %v201_v45, %v127_v41  ;;  %v1719_v52 = vpack.c.bf16 %v202_v46, %v128_v42  ;;  %v1703_v53 = vpack.c.bf16 %v200_v47, %v126_v43  ;;  %v1721_v54 = vpack.c.bf16 %v351_v48, %v277_v44 }
 0x162   :  { %v1829_v55 = vunpack.i.h.bf16 %v1827_v49  ;;  %v1828_v58 = vunpack.i.l.bf16 %v1827_v49  ;;  %v1804_v59 = vunpack.i.h.bf16 %v1802_v50  ;;  %v1803_v60 = vunpack.i.l.bf16 %v1802_v50 }
 0x163   :  { %1702 = vmatprep.subr.bf16.mxu0 %v1701_v51  ;;  %1720 = vmatpush1.bf16.msra.mxu1 %v1719_v52 }
 0x164   :  { %1704 = vmatpush1.bf16.msra.mxu0 %v1703_v53  ;;  %1722 = vmatprep.subr.bf16.mxu1 %v1721_v54  ;;  %v427_v1 = vsel %vm318_vm3, %v1828_v58, %v1829_v55  ;;  %v275_v12 = vsel %vm273_vm5, %v1803_v60, %v1804_v59  ;;  %v276_v16 = vsel %vm273_vm5, %v1804_v59, %v1808_v33  ;;  %v652_v54 = vld [vmem:[#allocation9] sm:$0xff] }
 0x165   :  { %v1832_v63 = vpop.permute.xlu1 %1831  ;;  %v1812_v56 = vpop.permute.xlu0 %1811  ;;  %v274_v17 = vsel %vm273_vm5, %v264_v62, %v1803_v60  ;;  %v1725_v28 = vpack.c.bf16 %v427_v1, %v2204_v14 }
 0x166   :  { %v1814_v57 = vunpack.i.h.bf16 %v1812_v56  ;;  %v1813_v0 = vunpack.i.l.bf16 %v1812_v56  ;;  %v1834_v10 = vunpack.i.h.bf16 %v1832_v63  ;;  %v1833_v19 = vunpack.i.l.bf16 %v1832_v63 }
 0x168   :  { %v349_v18 = vsel %vm347_vm4, %v1813_v0, %v1814_v57  ;;  %v350_v20 = vsel %vm347_vm4, %v1814_v57, %v1818_v29  ;;  %v348_v21 = vsel %vm347_vm4, %v338_v61, %v1813_v0  ;;  %v497_v39 = vsel %vm244_vm2, %v1833_v19, %v1834_v10 }
 0x169   :  { %v1842_v24 = vpop.permute.xlu1 %1841  ;;  %v1822_v26 = vpop.permute.xlu0 %1821  ;;  %v1705_v27 = vpack.c.bf16 %v349_v18, %v275_v12  ;;  %v1723_v7 = vpack.c.bf16 %v350_v20, %v276_v16  ;;  %v1707_v8 = vpack.c.bf16 %v348_v21, %v274_v17 }
 0x16a   :  { %v1844_v30 = vunpack.i.h.bf16 %v1842_v24  ;;  %v1843_v31 = vunpack.i.l.bf16 %v1842_v24  ;;  %v1824_v32 = vunpack.i.h.bf16 %v1822_v26  ;;  %v1823_v33 = vunpack.i.l.bf16 %v1822_v26  ;;  %v1245_v26 = vld [vmem:[#allocation7 + $0x6] ss:$8 sm:$0xf] }
 0x16b   :  { %1706 = vmatprep.subr.bf16.mxu0 %v1705_v27  ;;  %1724 = vmatpush1.bf16.msra.mxu1 %v1723_v7  ;;  %v1191_v24 = vrot.slane %v2334_v9, %v2106_v4  ;;  %v1254_v27 = vrot.slane %v1245_v26, %v2108_v5 }
 0x16c   :  { %1708 = vmatpush1.bf16.msra.mxu0 %v1707_v8  ;;  %1726 = vmatprep.subr.bf16.mxu1 %v1725_v28  ;;  %v425_v62 = vsel %vm318_vm3, %v1823_v33, %v1824_v32  ;;  %v426_v22 = vsel %vm318_vm3, %v1824_v32, %v1828_v58  ;;  %v424_v61 = vsel %vm318_vm3, %v2348_v11, %v1823_v33 }
 0x16d   :  { %v633_v34 = vpop.permute.xlu1 %632  ;;  %v1837_v35 = vpop.permute.xlu0 %1836  ;;  %v1709_v36 = vpack.c.bf16 %v425_v62, %v2214_v23  ;;  %v1727_v14 = vpack.c.bf16 %v426_v22, %v2202_v13  ;;  %v1711_v37 = vpack.c.bf16 %v424_v61, %v2190_v6  ;;  %v569_v29 = vsel %vm170_vm1, %v1843_v31, %v1844_v30 }
 0x16e   :  { %v1713_v40 = vpack.c.bf16 %v569_v29, %v497_v39  ;;  %v568_v41 = vsel %vm170_vm1, %v2350_v25, %v1843_v31  ;;  %v1839_v42 = vunpack.i.h.bf16 %v1837_v35  ;;  %v1838_v11 = vunpack.i.l.bf16 %v1837_v35 }
 0x16f   :  { %1710 = vmatprep.subr.bf16.mxu0 %v1709_v36  ;;  %1728 = vmatpush1.bf16.msra.mxu1 %v1727_v14  ;;  %v496_v13 = vsel %vm244_vm2, %v2346_v15, %v1833_v19  ;;  %v1262_v8 = vrot.slane %v1245_v26, %v2106_v4  ;;  %v1187_v28 = vrot.slane %v2334_v9, %v2102_v2  ;;  %v1387_v9 = vld [vmem:[#allocation7 + $0x20] ss:$8 sm:$0xf] }
 0x170   :  { %1712 = vmatpush1.bf16.msra.mxu0 %v1711_v37  ;;  %v1715_v45 = vpack.c.bf16 %v568_v41, %v496_v13  ;;  %v499_v46 = vsel %vm244_vm2, %v1838_v11, %v1839_v42  ;;  %v498_v48 = vsel %vm244_vm2, %v1834_v10, %v1838_v11  ;;  %v1250_v32 = vrot.slane %v1245_v26, %v2104_v3 }
 0x171   :  { %v637_v43 = vpop.permute.xlu1 %636  ;;  %v1847_v44 = vpop.permute.xlu0 %1846  ;;  %1714 = vmatprep.subr.bf16.mxu0 %v1713_v40  ;;  %v1258_v22 = vrot.slane %v1245_v26, %v2102_v2  ;;  %v1404_v36 = vrot.slane %v1387_v9, %v2106_v4  ;;  %v1400_v40 = vrot.slane %v1387_v9, %v2102_v2 }
 0x172   :  { %v1849_v6 = vunpack.i.h.bf16 %v1847_v44  ;;  %v1848_v23 = vunpack.i.l.bf16 %v1847_v44 }
 0x174   :  { %1716 = vmatpush1.bf16.msra.mxu0 %v1715_v45  ;;  %v571_v47 = vsel %vm170_vm1, %v1848_v23, %v1849_v6  ;;  %v570_v25 = vsel %vm170_vm1, %v1844_v30, %v1848_v23  ;;  %v1316_v30 = vld [vmem:[#allocation7 + $0x7] ss:$8 sm:$0xf] }
 0x175   :  { %v631_v49 = vpop.permute.xlu1 %630  ;;  %v635_v50 = vpop.permute.xlu0 %634  ;;  %v1729_v51 = vpack.c.bf16 %v571_v47, %v499_v46  ;;  %v1731_v52 = vpack.c.bf16 %v570_v25, %v498_v48  ;;  %v1325_v31 = vrot.slane %v1316_v30, %v2108_v5  ;;  %v1333_v62 = vrot.slane %v1316_v30, %v2106_v4 }
 0x176   :  { %v641_v53 = vsel %vm96_vm0, %v633_v34, %v635_v50  ;;  %v640_v15 = vsel %vm96_vm0, %v631_v49, %v633_v34  ;;  %v642_v59 = vsel %vm96_vm0, %v635_v50, %v637_v43  ;;  %v1396_v34 = vrot.slane %v1387_v9, %v2108_v5 }
 0x177   :  { %709 = vmatprep.subr.mxu0 %v641_v53  ;;  %1730 = vmatprep.subr.bf16.mxu1 %v1729_v51  ;;  %v1321_v35 = vrot.slane %v1316_v30, %v2104_v3  ;;  %v1329_v14 = vrot.slane %v1316_v30, %v2102_v2  ;;  %v1392_v5 = vrot.slane %v1387_v9, %v2104_v3 }
 0x178   :  { %710 = vmatpush1.msra.mxu0 %v640_v15  ;;  %1732 = vmatpush1.bf16.msra.mxu1 %v1731_v52 }
 0x179   :  { %v639_v55 = vpop.permute.xlu0 %638  ;;  %1697 = vmatmul.mubr.msk.f32.vlgmr.msra.gmra.mrb[0].mxu0 %vm689_vm8, %v652_v54  ;;  %v905_v60 = vpop.permute.xlu1 %904 }
 0x17a   :  { %v643_v58 = vsel %vm96_vm0, %v637_v43, %v639_v55  ;;  %1557 = vmatprep.mubr.f32.mxu0 %v2039_v38  ;;  %v920_v41 = vmul.f32 0.0, %v905_v60 }
 0x17b   :  { %780 = vmatprep.subr.mxu1 %v643_v58 }
 0x17c   :  { %781 = vmatpush1.msra.mxu1 %v642_v59 }
 0x17d   :  { %1698 = vmatmul.mubr.msk.f32.vlgmr.msra.gmra.mrb[0].mxu1 %vm689_vm8, %v652_v54  ;;  %v2395_v63 = vpop.permute.xlu0 %906  ;;  %v909_v3 = vpop.permute.xlu1 %908 }
 0x17e   :  { %1628 = vmatprep.mubr.f32.mxu1 %v2039_v38  ;;  %v2399_v56 = vsel %vm96_vm0, %v905_v60, %v2395_v63 }
 0x181   :  { %v2425_v7 = vpop.permute.xlu0 %975  ;;  %v911_v11 = vpop.permute.xlu1 %910 }
 0x182   :  { %v991_v29 = vmul.f32 0.0, %v2425_v7 }
 0x185   :  { %v2435_v33 = vpop.permute.xlu0 %979  ;;  %v978_v43 = vpop.permute.xlu1 %977 }
 0x189   :  { %v2441_v61 = vpop.permute.xlu0 %1046  ;;  %v2468_v44 = vpop.permute.xlu1 %981 }
 0x18a   :  { %v1062_v42 = vmul.f32 0.0, %v2441_v61 }
 0x18d   :  { %v2451_v37 = vpop.permute.xlu0 %1050  ;;  %v1049_v13 = vpop.permute.xlu1 %1048 }
 0x191   :  { %v2457_v39 = vpop.permute.xlu0 %1117  ;;  %v2470_v6 = vpop.permute.xlu1 %1052 }
 0x192   :  { %v1133_v4 = vmul.f32 0.0, %v2457_v39 }
 0x195   :  { %v2472_v2 = vpop.permute.xlu1 %1119  ;;  %v2474_v23 = vpop.permute.xlu0 %1121 }
 0x199   :  { %v2476_v45 = vpop.permute.xlu1 %1123  ;;  %v2478_v46 = vpop.permute.xlu0 %1192 }
 0x19d   :  { %v2480_v47 = vpop.permute.xlu1 %1194 }
 0x24c   :  { %v2401_v57 = vpop.f32.mrb[0].mxu0 }
 0x24d   :  { %v2403_v0 = vpop.f32.mrb[1].mxu0  ;;  %v839_v1 = vmul.f32 %v2401_v57, %v2401_v57 }
 0x24e   :  { %v835_v10 = vadd.f32 %v2403_v0, %v2401_v57  ;;  %v840_v38 = vmul.f32 %v2403_v0, %v2403_v0 }
 0x250   :  { %v2411_v12 = vpop.f32.mrb[0].mxu1  ;;  %836 = vadd.xlane.f32.xlu0 %v835_v10  ;;  %v841_v16 = vadd.f32 %v840_v38, %v839_v1 }
 0x251   :  { %v2413_v17 = vpop.f32.mrb[1].mxu1  ;;  %v858_v19 = vmul.f32 %v2411_v12, %v2411_v12 }
 0x252   :  { %v854_v18 = vadd.f32 %v2413_v17, %v2411_v12  ;;  %v859_v20 = vmul.f32 %v2413_v17, %v2413_v17 }
 0x254   :  { %855 = vadd.xlane.f32.xlu1 %v854_v18  ;;  %842 = vadd.xlane.f32.xlu0 %v841_v16  ;;  %v860_v21 = vadd.f32 %v859_v20, %v858_v19 }
 0x258   :  { %861 = vadd.xlane.f32.xlu0 %v860_v21 }
 0x265   :  { %1198 = vrot.lane.b32.xlu1 %v1191_v24, %s2035_s28 }
 0x269   :  { %1265 = vrot.lane.b32.xlu1 %v1254_v27, %s2036_s29 }
 0x26d   :  { %1269 = vrot.lane.b32.xlu1 %v1262_v8, %s2036_s29 }
 0x26e   :  { %1196 = vrot.lane.b32.xlu0 %v1187_v28, %s2035_s28 }
 0x271   :  { %1336 = vrot.lane.b32.xlu1 %v1325_v31, %s2037_s30 }
 0x272   :  { %1263 = vrot.lane.b32.xlu0 %v1250_v32, %s2036_s29 }
 0x275   :  { %1340 = vrot.lane.b32.xlu1 %v1333_v62, %s2037_s30 }
 0x276   :  { %1267 = vrot.lane.b32.xlu0 %v1258_v22, %s2036_s29 }
 0x279   :  { %1407 = vrot.lane.b32.xlu1 %v1396_v34, %s2038_s5 }
 0x27a   :  { %1334 = vrot.lane.b32.xlu0 %v1321_v35, %s2037_s30 }
 0x27d   :  { %1411 = vrot.lane.b32.xlu1 %v1404_v36, %s2038_s5 }
 0x27e   :  { %1338 = vrot.lane.b32.xlu0 %v1329_v14, %s2037_s30 }
 0x281   :  { %1001 = vrot.lane.b32.xlu1 %v991_v29, %s2037_s30 }
 0x282   :  { %1405 = vrot.lane.b32.xlu0 %v1392_v5, %s2038_s5 }
 0x285   :  { %1143 = vrot.lane.b32.xlu1 %v1133_v4, %s2035_s28  ;;  %v1055_v4 = vsel %vm244_vm2, %v1049_v13, %v2451_v37 }
 0x286   :  { %1409 = vrot.lane.b32.xlu0 %v1400_v40, %s2038_s5 }
 0x28a   :  { %930 = vrot.lane.b32.xlu0 %v920_v41, %s2038_s5 }
 0x28e   :  { %1072 = vrot.lane.b32.xlu0 %v1062_v42, %s2036_s29 }
 0x2dd   :  { %v837_v48 = vpop.xlane.xlu0 %836 }
 0x2de   :  { %v838_v25 = vmul.f32 0.00390625, %v837_v48 }
 0x2e0   :  { %v845_v52 = vmul.f32 %v838_v25, %v838_v25  ;;  %v848_v16 = vsub.f32 %v2401_v57, %v838_v25  ;;  %v849_v19 = vsub.f32 %v2403_v0, %v838_v25  ;;  %v913_v57 = vsel %vm96_vm0, %v2395_v63, %v909_v3 }
 0x2e1   :  { %v856_v49 = vpop.xlane.xlu1 %855  ;;  %v843_v50 = vpop.xlane.xlu0 %842 }
 0x2e2   :  { %v857_v51 = vmul.f32 0.00390625, %v856_v49  ;;  %v844_v53 = vmul.f32 0.00390625, %v843_v50  ;;  %v1056_v50 = vsel %vm244_vm2, %v2451_v37, %v2470_v6  ;;  %v1127_v37 = vsel %vm318_vm3, %v2474_v23, %v2476_v45 }
 0x2e4   :  { %v846_v15 = vsub.f32 %v844_v53, %v845_v52  ;;  %v864_v54 = vmul.f32 %v857_v51, %v857_v51  ;;  %v867_v24 = vsub.f32 %v2411_v12, %v857_v51  ;;  %v868_v26 = vsub.f32 %v2413_v17, %v857_v51 }
 0x2e5   :  { %v862_v55 = vpop.xlane.xlu0 %861  ;;  %v1199_v62 = vpop.permute.xlu1 %1198  ;;  %v983_v12 = vsel %vm170_vm1, %v2425_v7, %v978_v43  ;;  %v984_v17 = vsel %vm170_vm1, %v978_v43, %v2435_v33  ;;  %v914_v7 = vsel %vm96_vm0, %v909_v3, %v911_v11  ;;  %v985_v43 = vsel %vm170_vm1, %v2435_v33, %v2468_v44 }
 0x2e6   :  { %v847_v58 = vmax.f32 %v846_v15, 0.0  ;;  %v863_v59 = vmul.f32 0.00390625, %v862_v55  ;;  %v1126_v33 = vsel %vm318_vm3, %v2472_v2, %v2474_v23 }
 0x2e8   :  { %v850_v60 = vadd.f32 1e-05, %v847_v58  ;;  %v865_v1 = vsub.f32 %v863_v59, %v864_v54  ;;  %v1200_v59 = vsel %vm347_vm4, %v2478_v46, %v2480_v47 }
 0x2e9   :  { %v1197_v30 = vpop.permute.xlu0 %1196  ;;  %v1266_v29 = vpop.permute.xlu1 %1265 }
 0x2ea   :  { %1920 = vrsqrt.f32 %v850_v60  ;;  %v866_v10 = vmax.f32 %v865_v1, 0.0 }
 0x2ec   :  { %v869_v38 = vadd.f32 1e-05, %v866_v10 }
 0x2ed   :  { %v2505_v63 = vpop.permute.xlu0 %1263  ;;  %v1270_v51 = vpop.permute.xlu1 %1269 }
 0x2ee   :  { %1922 = vrsqrt.f32 %v869_v38  ;;  %v1202_v38 = vsel %vm347_vm4, %v1197_v30, %v1199_v62 }
 0x2f1   :  { %v1268_v49 = vpop.permute.xlu0 %1267 }
 0x2f4   :  { %v1921_v18 = vpop.eup %1920 }
 0x2f5   :  { %v852_v20 = vmul.f32 %v1921_v18, %v848_v16  ;;  %v853_v21 = vmul.f32 %v1921_v18, %v849_v19  ;;  %v1335_v55 = vpop.permute.xlu0 %1334  ;;  %v1337_v16 = vpop.permute.xlu1 %1336  ;;  %v1212_v19 = vmul.f32 0.0, %v1199_v62 }
 0x2f7   :  { %v2486_v27 = vmax.f32 %v852_v20, 0.0  ;;  %v2488_v28 = vmax.f32 %v853_v21, 0.0  ;;  %v1272_v21 = vsel %vm273_vm5, %v1266_v29, %v1268_v49 }
 0x2f8   :  { %v1923_v8 = vpop.eup %1922 }
 0x2f9   :  { %v871_v31 = vmul.f32 %v1923_v8, %v867_v24  ;;  %v872_v32 = vmul.f32 %v1923_v8, %v868_v26  ;;  %v921_v0 = vmul.f32 %v2399_v56, %v2486_v27  ;;  %v922_v22 = vmul.f32 %v913_v57, %v2488_v28  ;;  %v1339_v24 = vpop.permute.xlu0 %1338 }
 0x2fa   :  { %v992_v35 = vmul.f32 %v983_v12, %v2486_v27  ;;  %v993_v36 = vmul.f32 %v984_v17, %v2488_v28  ;;  %v1054_v56 = vsel %vm244_vm2, %v2441_v61, %v1049_v13  ;;  %v1064_v61 = vmul.f32 %v1055_v4, %v2488_v28 }
 0x2fb   :  { %v2499_v9 = vmax.f32 %v871_v31, 0.0  ;;  %v2501_v34 = vmax.f32 %v872_v32, 0.0  ;;  %v1850_v14 = vpack.i.bf16 %v922_v22, %v921_v0  ;;  %v1063_v5 = vmul.f32 %v1054_v56, %v2486_v27 }
 0x2fc   :  { %v1860_v40 = vpack.i.bf16 %v993_v36, %v992_v35  ;;  %v1135_v52 = vmul.f32 %v1126_v33, %v2488_v28  ;;  %v1209_v10 = vmul.f32 %v1200_v59, %v2488_v28  ;;  %v1271_v26 = vsel %vm273_vm5, %v2505_v63, %v1266_v29 }
 0x2fd   :  { %1851 = vrot.lane.b32.xlu0 %v1850_v14, %s2038_s5  ;;  %v923_v41 = vmul.f32 %v914_v7, %v2499_v9  ;;  %v924_v42 = vmul.f32 %v911_v11, %v2501_v34  ;;  %v994_v48 = vmul.f32 %v985_v43, %v2499_v9  ;;  %v995_v25 = vmul.f32 %v2468_v44, %v2501_v34 }
 0x2fe   :  { %v1870_v13 = vpack.i.bf16 %v1064_v61, %v1063_v5  ;;  %v1125_v11 = vsel %vm318_vm3, %v2457_v39, %v2472_v2  ;;  %v1065_v15 = vmul.f32 %v1056_v50, %v2499_v9  ;;  %v1066_v39 = vmul.f32 %v2470_v6, %v2501_v34 }
 0x2ff   :  { %v1855_v3 = vpack.i.bf16 %v924_v42, %v923_v41  ;;  %v1134_v44 = vmul.f32 %v1125_v11, %v2486_v27  ;;  %v1865_v53 = vpack.i.bf16 %v995_v25, %v994_v48  ;;  %v1201_v2 = vsel %vm347_vm4, %v2480_v47, %v1197_v30  ;;  %v1341_v30 = vpop.permute.xlu1 %1340 }
 0x300   :  { %v1210_v54 = vmul.f32 %v1201_v2, %v2499_v9  ;;  %v1875_v6 = vpack.i.bf16 %v1066_v39, %v1065_v15  ;;  %v1136_v60 = vmul.f32 %v1127_v37, %v2499_v9  ;;  %v1137_v1 = vmul.f32 %v2476_v45, %v2501_v34 }
 0x301   :  { %1861 = vrot.lane.b32.xlu0 %v1860_v40, %s2037_s30  ;;  %1856 = vrot.lane.b32.xlu1 %v1855_v3, %s2038_s5  ;;  %v1880_v58 = vpack.i.bf16 %v1135_v52, %v1134_v44  ;;  %v1211_v18 = vmul.f32 %v1202_v38, %v2501_v34  ;;  %v1273_v47 = vsel %vm273_vm5, %v1268_v49, %v1270_v51  ;;  %v1283_v45 = vmul.f32 0.0, %v1270_v51 }
 0x302   :  { %v1890_v23 = vpack.i.bf16 %v1210_v54, %v1209_v10  ;;  %v1885_v20 = vpack.i.bf16 %v1137_v1, %v1136_v60  ;;  %v1282_v8 = vmul.f32 %v1273_v47, %v2501_v34  ;;  %v1208_v31 = vmul.f32 %v2478_v46, %v2486_v27  ;;  %v1406_v46 = vpop.permute.xlu0 %1405 }
 0x303   :  { %v1895_v32 = vpack.i.bf16 %v1212_v19, %v1211_v18  ;;  %v1281_v62 = vmul.f32 %v1272_v21, %v2499_v9  ;;  %v1344_v57 = vsel %vm199_vm6, %v1339_v24, %v1341_v30  ;;  %v1343_v0 = vsel %vm199_vm6, %v1337_v16, %v1339_v24  ;;  %v1408_v40 = vpop.permute.xlu1 %1407 }
 0x304   :  { %v1280_v12 = vmul.f32 %v1271_v26, %v2488_v28  ;;  %v1905_v17 = vpack.i.bf16 %v1283_v45, %v1282_v8  ;;  %v1354_v22 = vmul.f32 0.0, %v1341_v30  ;;  %v1342_v35 = vsel %vm199_vm6, %v1335_v55, %v1337_v16 }
 0x305   :  { %1871 = vrot.lane.b32.xlu0 %v1870_v13, %s2036_s29  ;;  %1866 = vrot.lane.b32.xlu1 %v1865_v53, %s2037_s30  ;;  %v1353_v36 = vmul.f32 %v1344_v57, %v2501_v34  ;;  %v1352_v56 = vmul.f32 %v1343_v0, %v2499_v9  ;;  %v1351_v7 = vmul.f32 %v1342_v35, %v2488_v28 }
 0x306   :  { %v1900_v14 = vpack.i.bf16 %v1281_v62, %v1280_v12  ;;  %v1410_v4 = vpop.permute.xlu0 %1409  ;;  %v1350_v41 = vmul.f32 %v1335_v55, %v2486_v27  ;;  %v1279_v42 = vmul.f32 %v2505_v63, %v2486_v27  ;;  %v1413_v61 = vsel %vm125_vm7, %v1406_v46, %v1408_v40 }
 0x307   :  { %v1915_v29 = vpack.i.bf16 %v1354_v22, %v1353_v36  ;;  %v1910_v5 = vpack.i.bf16 %v1352_v56, %v1351_v7  ;;  %v1414_v43 = vsel %vm125_vm7, %v1408_v40, %v1410_v4  ;;  %v1412_v48 = vpop.permute.xlu1 %1411  ;;  %v1422_v25 = vmul.f32 %v1413_v61, %v2488_v28 }
 0x308   :  { %v1423_v3 = vmul.f32 %v1414_v43, %v2499_v9  ;;  %v1425_v49 = vmul.f32 0.0, %v1412_v48  ;;  %v1415_v13 = vsel %vm125_vm7, %v1410_v4, %v1412_v48  ;;  %v1421_v11 = vmul.f32 %v1406_v46, %v2486_v27 }
 0x309   :  { %1881 = vrot.lane.b32.xlu0 %v1880_v58, %s2035_s28  ;;  %1876 = vrot.lane.b32.xlu1 %v1875_v6, %s2036_s29  ;;  %v1424_v63 = vmul.f32 %v1415_v13, %v2501_v34 }
 0x30a   :  { %v931_v33 = vpop.permute.xlu0 %930 }
 0x30b   :  { %v1002_v51 = vpop.permute.xlu1 %1001 }
 0x30d   :  { %1891 = vrot.lane.b32.xlu0 %v1890_v23, %s2034_s27  ;;  %1886 = vrot.lane.b32.xlu1 %v1885_v20, %s2035_s28 }
 0x30e   :  { %v1073_v50 = vpop.permute.xlu0 %1072 }
 0x30f   :  { %v1144_v52 = vpop.permute.xlu1 %1143 }
 0x311   :  { %1218 = vrot.lane.b32.xlu0 %v1208_v31, %s2034_s27  ;;  %1896 = vrot.lane.b32.xlu1 %v1895_v32, %s2034_s27 }
 0x315   :  { %1906 = vrot.lane.b32.xlu0 %v1905_v17, %s2033_s26  ;;  %1901 = vrot.lane.b32.xlu1 %v1900_v14, %s2033_s26 }
 0x319   :  { %1916 = vrot.lane.b32.xlu0 %v1915_v29, %s2032_s25  ;;  %1911 = vrot.lane.b32.xlu1 %v1910_v5, %s2032_s25 }
 0x31d   :  { %1360 = vrot.lane.b32.xlu0 %v1350_v41, %s2032_s25  ;;  %1289 = vrot.lane.b32.xlu1 %v1279_v42, %s2033_s26 }
 0x321   :  { %1435 = vrot.lane.b32.xlu0 %v1423_v3, %s2031_s2  ;;  %1433 = vrot.lane.b32.xlu1 %v1422_v25, %s2031_s2 }
 0x325   :  { %1439 = vrot.lane.b32.xlu0 %v1425_v49, %s2031_s2  ;;  %1437 = vrot.lane.b32.xlu1 %v1424_v63, %s2031_s2 }
 0x329   :  { %1431 = vrot.lane.b32.xlu1 %v1421_v11, %s2031_s2 }
 0x36f   :  { %v1852_v44 = vpop.permute.xlu0 %1851 }
 0x370   :  { %v1854_v53 = vunpack.i.h.bf16 %v1852_v44  ;;  %v1853_v15 = vunpack.i.l.bf16 %v1852_v44 }
 0x372   :  { %v940_v55 = vsel %vm125_vm7, %v931_v33, %v1853_v15  ;;  %v941_v59 = vsel %vm125_vm7, %v1853_v15, %v1854_v53 }
 0x373   :  { %v1862_v39 = vpop.permute.xlu0 %1861  ;;  %v1857_v2 = vpop.permute.xlu1 %1856 }
 0x374   :  { %v1864_v37 = vunpack.i.h.bf16 %v1862_v39  ;;  %v1863_v54 = vunpack.i.l.bf16 %v1862_v39  ;;  %v1859_v60 = vunpack.i.h.bf16 %v1857_v2  ;;  %v1858_v1 = vunpack.i.l.bf16 %v1857_v2 }
 0x376   :  { %v1011_v58 = vsel %vm199_vm6, %v1002_v51, %v1863_v54  ;;  %v1012_v6 = vsel %vm199_vm6, %v1863_v54, %v1864_v37  ;;  %v942_v21 = vsel %vm125_vm7, %v1854_v53, %v1858_v1  ;;  %v943_v26 = vsel %vm125_vm7, %v1858_v1, %v1859_v60 }
 0x377   :  { %v1735_v10 = vpack.c.bf16 %v1011_v58, %v940_v55  ;;  %v1872_v38 = vpop.permute.xlu0 %1871  ;;  %v1733_v16 = vpack.c.bf16 %v1012_v6, %v941_v59  ;;  %v1867_v23 = vpop.permute.xlu1 %1866 }
 0x378   :  { %v1869_v19 = vunpack.i.h.bf16 %v1867_v23  ;;  %v1868_v18 = vunpack.i.l.bf16 %v1867_v23  ;;  %v1873_v47 = vunpack.i.l.bf16 %v1872_v38  ;;  %v1874_v20 = vunpack.i.h.bf16 %v1872_v38 }
 0x379   :  { %1734 = vmatprep.subr.bf16.mxu0 %v1733_v16 }
 0x37a   :  { %1736 = vmatpush1.bf16.msra.mxu0 %v1735_v10  ;;  %v1013_v24 = vsel %vm199_vm6, %v1864_v37, %v1868_v18  ;;  %v1014_v8 = vsel %vm199_vm6, %v1868_v18, %v1869_v19  ;;  %v1082_v0 = vsel %vm273_vm5, %v1073_v50, %v1873_v47  ;;  %v1083_v22 = vsel %vm273_vm5, %v1873_v47, %v1874_v20 }
 0x37b   :  { %v1882_v45 = vpop.permute.xlu0 %1881  ;;  %v1751_v30 = vpack.c.bf16 %v1013_v24, %v942_v21  ;;  %v1877_v31 = vpop.permute.xlu1 %1876  ;;  %v1749_v57 = vpack.c.bf16 %v1014_v8, %v943_v26 }
 0x37c   :  { %v1884_v32 = vunpack.i.h.bf16 %v1882_v45  ;;  %v1883_v62 = vunpack.i.l.bf16 %v1882_v45  ;;  %v1878_v12 = vunpack.i.l.bf16 %v1877_v31  ;;  %v1879_v36 = vunpack.i.h.bf16 %v1877_v31 }
 0x37d   :  { %1750 = vmatprep.subr.bf16.mxu1 %v1749_v57 }
 0x37e   :  { %v1153_v17 = vsel %vm347_vm4, %v1144_v52, %v1883_v62  ;;  %v1154_v35 = vsel %vm347_vm4, %v1883_v62, %v1884_v32  ;;  %1752 = vmatpush1.bf16.msra.mxu1 %v1751_v30  ;;  %v1084_v41 = vsel %vm273_vm5, %v1874_v20, %v1878_v12  ;;  %v1085_v48 = vsel %vm273_vm5, %v1878_v12, %v1879_v36  ;;  %v1453_v12 = vld [vmem:[%s2654_s3] sm:$0xff]  ;;  %s2040_s3 = smov [#allocation10]  }
 0x37f   :  { %v1739_v46 = vpack.c.bf16 %v1153_v17, %v1082_v0  ;;  %v1892_v14 = vpop.permute.xlu0 %1891  ;;  %v1737_v56 = vpack.c.bf16 %v1154_v35, %v1083_v22  ;;  %v1887_v7 = vpop.permute.xlu1 %1886  ;;  %s1687_s8 = sshll.u32 %s2040_s3, 4  ;;  %s1688_s8 = int_to_ptr.vmem [resolvable:$true] %s1687_s8 }
 0x380   :  { %v1894_v29 = vunpack.i.h.bf16 %v1892_v14  ;;  %v1893_v5 = vunpack.i.l.bf16 %v1892_v14  ;;  %v1889_v4 = vunpack.i.h.bf16 %v1887_v7  ;;  %v1888_v40 = vunpack.i.l.bf16 %v1887_v7  ;;  %s1998_s9 = scalar_lea.vmem %s1688_s8, 512  ;;  %p2003_p11 = scmp.lt.s32.totalorder %s1688_s8, %s1688_s8 }
 0x381   :  { %1738 = vmatprep.subr.bf16.mxu0 %v1737_v56  ;;  %p1999_p10 = scmp.ne.s32.totalorder %s1688_s8, %s1998_s9  ;;  %p2004_p12 = scmp.lt.s32.totalorder %s1998_s9, %s1998_s9 }
 0x382   :  { %1740 = vmatpush1.bf16.msra.mxu0 %v1739_v46  ;;  %v1229_v42 = vsel %vm318_vm3, %v1893_v5, %v1894_v29  ;;  %v1155_v43 = vsel %vm347_vm4, %v1884_v32, %v1888_v40  ;;  %v1156_v25 = vsel %vm347_vm4, %v1888_v40, %v1889_v4 }
 0x383   :  { %v1219_v61 = vpop.permute.xlu0 %1218  ;;  %v1741_v3 = vpack.c.bf16 %v1229_v42, %v2488_v28  ;;  %v1755_v49 = vpack.c.bf16 %v1155_v43, %v1084_v41  ;;  %v1897_v13 = vpop.permute.xlu1 %1896  ;;  %v1753_v11 = vpack.c.bf16 %v1156_v25, %v1085_v48  ;;  %p2005_p13 = por %p2004_p12, %p2003_p11 }
 0x384   :  { %v1228_v63 = vsel %vm318_vm3, %v1219_v61, %v1893_v5  ;;  %v1899_v33 = vunpack.i.h.bf16 %v1897_v13  ;;  %v1898_v50 = vunpack.i.l.bf16 %v1897_v13 }
 0x385   :  { %v1743_v51 = vpack.c.bf16 %v1228_v63, %v2486_v27  ;;  %1742 = vmatprep.subr.bf16.mxu0 %v1741_v3  ;;  %1754 = vmatprep.subr.bf16.mxu1 %v1753_v11  ;;  %p2006_p0 = pnand %p2005_p13, %p1999_p10 }
 0x386   :  { %v1230_v44 = vsel %vm318_vm3, %v1894_v29, %v1898_v50  ;;  %1756 = vmatpush1.bf16.msra.mxu1 %v1755_v49  ;;  %v1231_v28 = vsel %vm318_vm3, %v1898_v50, %v1899_v33 }
 0x387   :  { %v1907_v52 = vpop.permute.xlu0 %1906  ;;  %1744 = vmatpush1.bf16.msra.mxu0 %v1743_v51  ;;  %v1759_v53 = vpack.c.bf16 %v1230_v44, %v2499_v9  ;;  %v1902_v15 = vpop.permute.xlu1 %1901  ;;  %v1757_v39 = vpack.c.bf16 %v1231_v28, %v2501_v34 }
 0x388   :  { %v1904_v2 = vunpack.i.h.bf16 %v1902_v15  ;;  %v1909_v37 = vunpack.i.h.bf16 %v1907_v52  ;;  %v1908_v54 = vunpack.i.l.bf16 %v1907_v52  ;;  %v1903_v55 = vunpack.i.l.bf16 %v1902_v15 }
 0x389   :  { %1758 = vmatprep.subr.bf16.mxu1 %v1757_v39 }
 0x38a   :  { %1760 = vmatpush1.bf16.msra.mxu1 %v1759_v53  ;;  %v1301_v10 = vsel %vm244_vm2, %v1904_v2, %v1908_v54  ;;  %v1302_v38 = vsel %vm244_vm2, %v1908_v54, %v1909_v37  ;;  %v1300_v23 = vsel %vm244_vm2, %v1903_v55, %v1904_v2 }
 0x38b   :  { %v1917_v27 = vpop.permute.xlu0 %1916  ;;  %v1912_v58 = vpop.permute.xlu1 %1911 }
 0x38c   :  { %v1919_v59 = vunpack.i.h.bf16 %v1917_v27  ;;  %v1918_v6 = vunpack.i.l.bf16 %v1917_v27  ;;  %v1914_v60 = vunpack.i.h.bf16 %v1912_v58  ;;  %v1913_v1 = vunpack.i.l.bf16 %v1912_v58  ;;  %v1928_v58 = vld [vmem:[#allocation4] sm:$0xff] }
 0x38e   :  { %v1373_v9 = vsel %vm170_vm1, %v1918_v6, %v1919_v59  ;;  %v1372_v34 = vsel %vm170_vm1, %v1914_v60, %v1918_v6  ;;  %v1371_v19 = vsel %vm170_vm1, %v1913_v1, %v1914_v60  ;;  %v1929_v6 = vld [vmem:[#allocation4 + $0x8] sm:$0xff] }
 0x38f   :  { %v1361_v16 = vpop.permute.xlu0 %1360  ;;  %v1761_v18 = vpack.c.bf16 %v1373_v9, %v1302_v38  ;;  %v1763_v47 = vpack.c.bf16 %v1372_v34, %v1301_v10  ;;  %v1290_v20 = vpop.permute.xlu1 %1289  ;;  %v1745_v24 = vpack.c.bf16 %v1371_v19, %v1300_v23  ;;  %v1930_v9 = vld [vmem:[#allocation4 + $0x10] sm:$0xff] }
 0x390   :  { %v1370_v21 = vsel %vm170_vm1, %v1361_v16, %v1913_v1  ;;  %v1299_v45 = vsel %vm244_vm2, %v1290_v20, %v1903_v55  ;;  %v1931_v16 = vld [vmem:[#allocation4 + $0x18] sm:$0xff] }
 0x391   :  { %1762 = vmatprep.subr.bf16.mxu1 %v1761_v18  ;;  %v1747_v26 = vpack.c.bf16 %v1370_v21, %v1299_v45  ;;  %1746 = vmatprep.subr.bf16.mxu0 %v1745_v24 }
 0x392   :  { %1764 = vmatpush1.bf16.msra.mxu1 %v1763_v47 }
 0x393   :  { %v1436_v8 = vpop.permute.xlu0 %1435  ;;  %v1434_v30 = vpop.permute.xlu1 %1433  ;;  %1748 = vmatpush1.bf16.msra.mxu0 %v1747_v26 }
 0x394   :  { %v1442_v31 = vsel %vm96_vm0, %v1434_v30, %v1436_v8 }
 0x395   :  { %1509 = vmatprep.subr.mxu0 %v1442_v31 }
 0x397   :  { %v1440_v32 = vpop.permute.xlu0 %1439  ;;  %v1438_v62 = vpop.permute.xlu1 %1437 }
 0x398   :  { %v1443_v57 = vsel %vm96_vm0, %v1436_v8, %v1438_v62  ;;  %v1444_v0 = vsel %vm96_vm0, %v1438_v62, %v1440_v32 }
 0x399   :  { %1580 = vmatprep.subr.mxu1 %v1444_v0 }
 0x39a   :  { %1581 = vmatpush1.msra.mxu1 %v1443_v57 }
 0x39b   :  { %v1432_v17 = vpop.permute.xlu1 %1431  ;;  %1700 = vmatmul.mubr.msk.f32.vlgmr.msra.gmra.mrb[2].mxu1 %vm689_vm8, %v1453_v12 }
 0x39c   :  { %v1441_v22 = vsel %vm96_vm0, %v1432_v17, %v1434_v30 }
 0x39d   :  { %1510 = vmatpush1.msra.mxu0 %v1441_v22 }
 0x39e   :  { %1699 = vmatmul.mubr.msk.f32.vlgmr.msra.gmra.mrb[2].mxu0 %vm689_vm8, %v1453_v12 }
 0x46e   :  { %v1630_v35 = vpop.f32.mrb[2].mxu1 }
 0x46f   :  { %v1658_v36 = vmul.f32 %v1630_v35, %v1630_v35  ;;  %v1632_v46 = vpop.f32.mrb[3].mxu1 }
 0x470   :  { %v1654_v14 = vadd.f32 %v1632_v46, %v1630_v35  ;;  %v1659_v56 = vmul.f32 %v1632_v46, %v1632_v46 }
 0x471   :  { %v1559_v7 = vpop.f32.mrb[2].mxu0 }
 0x472   :  { %v1660_v29 = vadd.f32 %v1659_v56, %v1658_v36  ;;  %v1639_v5 = vmul.f32 %v1559_v7, %v1559_v7  ;;  %1655 = vadd.xlane.f32.xlu1 %v1654_v14  ;;  %v1561_v4 = vpop.f32.mrb[3].mxu0 }
 0x473   :  { %v1635_v40 = vadd.f32 %v1561_v4, %v1559_v7  ;;  %v1640_v41 = vmul.f32 %v1561_v4, %v1561_v4 }
 0x475   :  { %v1641_v42 = vadd.f32 %v1640_v41, %v1639_v5  ;;  %1636 = vadd.xlane.f32.xlu0 %v1635_v40 }
 0x479   :  { %1642 = vadd.xlane.f32.xlu0 %v1641_v42 }
 0x47d   :  { %1661 = vadd.xlane.f32.xlu0 %v1660_v29 }
 0x4ff   :  { %v1656_v3 = vpop.xlane.xlu1 %1655 }
 0x500   :  { %v1657_v25 = vmul.f32 0.00390625, %v1656_v3 }
 0x502   :  { %v1637_v43 = vpop.xlane.xlu0 %1636  ;;  %v1664_v11 = vmul.f32 %v1657_v25, %v1657_v25  ;;  %v1667_v55 = vsub.f32 %v1630_v35, %v1657_v25  ;;  %v1668_v27 = vsub.f32 %v1632_v46, %v1657_v25 }
 0x503   :  { %v1638_v61 = vmul.f32 0.00390625, %v1637_v43 }
 0x505   :  { %v1645_v49 = vmul.f32 %v1638_v61, %v1638_v61  ;;  %v1648_v15 = vsub.f32 %v1559_v7, %v1638_v61  ;;  %v1649_v39 = vsub.f32 %v1561_v4, %v1638_v61 }
 0x506   :  { %v1643_v48 = vpop.xlane.xlu0 %1642 }
 0x507   :  { %v1644_v13 = vmul.f32 0.00390625, %v1643_v48 }
 0x509   :  { %v1646_v63 = vsub.f32 %v1644_v13, %v1645_v49 }
 0x50a   :  { %v1662_v33 = vpop.xlane.xlu0 %1661 }
 0x50b   :  { %v1647_v50 = vmax.f32 %v1646_v63, 0.0  ;;  %v1663_v51 = vmul.f32 0.00390625, %v1662_v33 }
 0x50d   :  { %v1650_v44 = vadd.f32 1e-05, %v1647_v50  ;;  %v1665_v52 = vsub.f32 %v1663_v51, %v1664_v11 }
 0x50f   :  { %1924 = vrsqrt.f32 %v1650_v44  ;;  %v1666_v28 = vmax.f32 %v1665_v52, 0.0 }
 0x511   :  { %v1669_v53 = vadd.f32 1e-05, %v1666_v28 }
 0x513   :  { %1926 = vrsqrt.f32 %v1669_v53 }
 0x519   :  { %v1925_v2 = vpop.eup %1924 }
 0x51a   :  { %v1652_v37 = vmul.f32 %v1925_v2, %v1648_v15  ;;  %v1653_v54 = vmul.f32 %v1925_v2, %v1649_v39 }
 0x51c   :  { %v1673_v59 = vadd.f32 %v1928_v58, %v1652_v37  ;;  %v1674_v60 = vadd.f32 %v1929_v6, %v1653_v54 }
 0x51d   :  { %v1927_v1 = vpop.eup %1926 }
 0x51e   :  { %v1671_v10 = vmul.f32 %v1927_v1, %v1667_v55  ;;  %v1672_v38 = vmul.f32 %v1927_v1, %v1668_v27  ;;  %1677 = vst [vmem:[#allocation10] sm:$0xff] %v1673_v59  ;;  %1678 = vst [vmem:[#allocation10 + $0x8] sm:$0xff] %v1674_v60 }
 0x520   :  { %v1675_v34 = vadd.f32 %v1930_v9, %v1671_v10  ;;  %v1676_v23 = vadd.f32 %v1931_v16, %v1672_v38 }
 0x522   :  { %1679 = vst [vmem:[#allocation10 + $0x10] sm:$0xff] %v1675_v34  ;;  %1680 = vst [vmem:[#allocation10 + $0x18] sm:$0xff] %v1676_v23 }
 0x523   :  { %2009 = shalt.err (!%p2006_p0)
}
 0x524   :  { %s2010_s12 = scalar_lea.hbm %s2655_s4, 512 }
 0x525   :  { %p2011_p1 = scmp.ne.s32.totalorder %s2655_s4, %s2010_s12  ;;  %p2014_p2 = scmp.lt.u32.totalorder %s2010_s12, %s2655_s4 }
 0x527   :  { %p2016_p3 = pnand %p2014_p2, %p2011_p1 }
 0x529   :  { %2019 = shalt.err (!%p2016_p3)
}
 0x52a   :  { %1690 = dma.vmem_to_hbm [thread:$0]  %s1688_s8, 512, %s2655_s4, [#allocation6]  }
 0x52b   :  { %2024 = dma.done.wait [#allocation6], 512  }
 0x52c   :  { %2025 = vsyncadd [#allocation6], 4294966784 }
 0x52d   :  { %1694 = vsyncpa [#allocation5], 1 }
 0x52e   :  { %1695 = vsyncpa [#allocation8], 1 }
 0x52f   :  { %1696 = vsyncpa [#allocation6], 1 }

</bundles_post_ra>
